<compile_context>
chip_gen: v5e
topology: v5e:2x2
jax: 0.10.0
libtpu: 0.0.40
codegen_flags: <defaults>
</compile_context>

<pallas_src>
import functools
import math

import jax
import jax.numpy as jnp
from jax import lax
from jax.experimental import pallas as pl
from jax.experimental.pallas import tpu as pltpu

# Small synthetic BERT config (structure matches the PyTorch module's forward).
VOCAB = 100
TYPE_VOCAB = 2
MAX_POS = 32
HIDDEN = 32
NUM_HEADS = 4
HEAD_DIM = HIDDEN // NUM_HEADS
FFN = 4 * HIDDEN
NUM_LAYERS = 2
NUM_CLASSES = 2
LN_EPS = 1e-12

# Row offsets inside the concatenated embedding table [word | position | token-type].
POS_OFF = VOCAB
TYPE_OFF = VOCAB + MAX_POS
TBL_ROWS = VOCAB + MAX_POS + TYPE_VOCAB

_VMEM = pl.BlockSpec(memory_space=pltpu.MemorySpace.VMEM)
_SMEM = pl.BlockSpec(memory_space=pltpu.MemorySpace.SMEM)

# Row layout of the consolidated per-layer f32 vector bundle, shape (L, 8, FFN=128):
#   row 0: QKV bias (3H=96, cols 0:96)     row 1: FFN-in bias (FFN)
#   row 2: attn-out bias (H)               rows 3/4: LN1 gamma / beta (H)
#   row 5: FFN-out bias (H)                rows 6/7: LN2 gamma / beta (H)


# ----------------------------- in-kernel helpers ---------------------------------


def _layernorm(x, g, b):
    mu = jnp.mean(x, axis=-1, keepdims=True)
    d = x - mu
    var = jnp.mean(d * d, axis=-1, keepdims=True)
    return d * jax.lax.rsqrt(var + LN_EPS) * g + b


def _gelu(x):
    # TODO(synk): HF/PyTorch BERT defaults to exact erf GELU; tanh approximation used here.
    return 0.5 * x * (1.0 + jnp.tanh(0.7978845608028654 * (x + 0.044715 * x * x * x)))


# ----------------------------- fused kernel --------------------------------------


def _bert_loss_kernel(
    tok_ref, seg_ref, lab_ref,                    # SMEM int32: (B*S,), (B*S,), (B,)
    tbl_ref, embln_ref,                           # VMEM f32: emb table, emb LN (2,H)
    wqkv_ref, wo_ref, w1_ref, w2_ref, lbias_ref,  # VMEM stacked per-layer weights
    wp_ref, wd_ref, headb_ref,                    # VMEM pooler / classifier params
    loss_ref,                                     # VMEM f32 (1,1) output
    buf_ref,                                      # VMEM f32 (B*S, H) scratch
    *, batch, seq):
    h, nh, hd = HIDDEN, NUM_HEADS, HEAD_DIM

    # ---- embedding gather (word + position + token-type), fused in-kernel ----
    # TODO(synk): attention padding mask (token_ids == 0) not applied; all tokens valid here.
    for i in range(batch * seq):
        tok = tok_ref[i]
        seg = seg_ref[i]
        pos_row = POS_OFF + (i % seq)             # static position row index
        buf_ref[i:i + 1, :] = (tbl_ref[pl.ds(tok, 1), :]
                               + tbl_ref[pos_row:pos_row + 1, :]
                               + tbl_ref[pl.ds(TYPE_OFF + seg, 1), :])

    x = _layernorm(buf_ref[...], embln_ref[0:1, :], embln_ref[1:2, :])   # (B*S, H) f32

    # ---- encoder layers: fori_loop bounds live ranges; stacked weights indexed by l ----
    def layer_body(l, x):
        lb = lbias_ref[l]                                                # (8, 128) f32
        b_qkv = lb[0:1, 0:3 * h]
        b_ffn1 = lb[1:2, :]
        b_attn = lb[2:3, 0:h]
        ln1_g, ln1_b = lb[3:4, 0:h], lb[4:5, 0:h]
        b_ffn2 = lb[5:6, 0:h]
        ln2_g, ln2_b = lb[6:7, 0:h], lb[7:8, 0:h]

        # fused QKV projection (1/sqrt(hd) already folded into the Q weights at init)
        qkv = jnp.dot(x.astype(jnp.bfloat16), wqkv_ref[l],
                      preferred_element_type=jnp.float32) + b_qkv        # (B*S, 3H) f32

        # multi-head self-attention: batch handled by one 3-D einsum per head,
        # per-head context written straight into the VMEM scratch (no concats).
        for hh in range(nh):
            c0 = hh * hd
            qh = qkv[:, c0:c0 + hd].reshape(batch, seq, hd).astype(jnp.bfloat16)
            kh = qkv[:, h + c0:h + c0 + hd].reshape(batch, seq, hd).astype(jnp.bfloat16)
            vh = qkv[:, 2 * h + c0:2 * h + c0 + hd].reshape(batch, seq, hd).astype(jnp.bfloat16)
            s = jnp.einsum('bqd,bkd->bqk', qh, kh,
                           preferred_element_type=jnp.float32)           # (B, S, S) f32
            m = jnp.max(s, axis=-1, keepdims=True)
            p = jnp.exp(s - m)
            p = p * pl.reciprocal(jnp.sum(p, axis=-1, keepdims=True), approx=True)
            ctx = jnp.einsum('bqk,bkd->bqd', p.astype(jnp.bfloat16), vh,
                             preferred_element_type=jnp.float32)         # (B, S, hd) f32
            buf_ref[:, c0:c0 + hd] = ctx.reshape(batch * seq, hd)

        # output projection + residual + LayerNorm
        o = jnp.dot(buf_ref[...].astype(jnp.bfloat16), wo_ref[l],
                    preferred_element_type=jnp.float32) + b_attn
        x = _layernorm(o + x, ln1_g, ln1_b)

        # FFN (GELU) + residual + LayerNorm
        hmid = _gelu(jnp.dot(x.astype(jnp.bfloat16), w1_ref[l],
                             preferred_element_type=jnp.float32) + b_ffn1)
        o2 = jnp.dot(hmid.astype(jnp.bfloat16), w2_ref[l],
                     preferred_element_type=jnp.float32) + b_ffn2
        return _layernorm(o2 + x, ln2_g, ln2_b)

    x = lax.fori_loop(0, NUM_LAYERS, layer_body, x)

    # ---- pooler (tanh on [CLS]) + classifier + cross-entropy, fully fused ----
    cls = x.reshape(batch, seq, h)[:, 0, :]                              # (B, H)
    pooled = jnp.tanh(jnp.dot(cls.astype(jnp.bfloat16), wp_ref[...],
                              preferred_element_type=jnp.float32)
                      + headb_ref[0:1, :])
    # TODO(synk): nn.Dropout(0.1) applied as identity (eval semantics / no RNG state).
    logits = jnp.dot(pooled.astype(jnp.bfloat16), wd_ref[...],
                     preferred_element_type=jnp.float32) + headb_ref[1:2, 0:NUM_CLASSES]

    iota_c = lax.broadcasted_iota(jnp.int32, (1, NUM_CLASSES), 1)
    total = jnp.zeros((1, 1), jnp.float32)
    for b in range(batch):                                               # B is tiny & static
        row = logits[b:b + 1, :]
        m = jnp.max(row, axis=-1, keepdims=True)
        lse = jnp.log(jnp.sum(jnp.exp(row - m), axis=-1, keepdims=True)) + m
        picked = jnp.sum(jnp.where(iota_c == lab_ref[b], row, 0.0),
                         axis=-1, keepdims=True)
        total = total + (lse - picked)
    loss_ref[...] = total * (1.0 / batch)                                # mean reduction


# ----------------------------- parameters ----------------------------------------


def init_params(key):
    keys = iter(jax.random.split(key, 64))

    def nrm(shape, scale=0.02):
        return scale * jax.random.normal(next(keys), shape, dtype=jnp.float32)

    def stack(make):
        return jnp.stack([make() for _ in range(NUM_LAYERS)], axis=0)

    # Embedding tables concatenated row-wise: [word | position | token-type].
    emb_tbl = jnp.concatenate(
        [nrm((VOCAB, HIDDEN)), nrm((MAX_POS, HIDDEN)), nrm((TYPE_VOCAB, HIDDEN))], axis=0)
    emb_ln = jnp.stack([jnp.ones((HIDDEN,), jnp.float32),
                        jnp.zeros((HIDDEN,), jnp.float32)], axis=0)       # (2, H): gamma, beta

    # Fold 1/sqrt(HEAD_DIM) into the Q third of the fused QKV weight (one-time transform).
    scale = 1.0 / math.sqrt(HEAD_DIM)
    q_scale = jnp.concatenate([jnp.full((HIDDEN,), scale, jnp.float32),
                               jnp.ones((2 * HIDDEN,), jnp.float32)], axis=0)
    wqkv = (stack(lambda: nrm((HIDDEN, 3 * HIDDEN))) * q_scale[None, None, :]
            ).astype(jnp.bfloat16)

    # Per-layer f32 vectors packed into one (L, 8, FFN) array (see row layout above).
    def pad_row(v):
        return jnp.pad(v, (0, FFN - v.shape[0]))
    zeros_h = jnp.zeros((HIDDEN,), jnp.float32)
    ones_h = jnp.ones((HIDDEN,), jnp.float32)
    layer_rows = jnp.stack([
        pad_row(jnp.zeros((3 * HIDDEN,), jnp.float32)),   # QKV bias (Q part pre-scaled; zero here)
        jnp.zeros((FFN,), jnp.float32),                   # FFN-in bias
        pad_row(zeros_h),                                 # attn-out bias
        pad_row(ones_h), pad_row(zeros_h),                # LN1 gamma / beta
        pad_row(zeros_h),                                 # FFN-out bias
        pad_row(ones_h), pad_row(zeros_h),                # LN2 gamma / beta
    ], axis=0)
    lbias = jnp.tile(layer_rows[None], (NUM_LAYERS, 1, 1))

    return {
        "emb_tbl": emb_tbl,
        "emb_ln": emb_ln,
        "wqkv": wqkv,
        "wo": stack(lambda: nrm((HIDDEN, HIDDEN))).astype(jnp.bfloat16),
        "w1": stack(lambda: nrm((HIDDEN, FFN))).astype(jnp.bfloat16),
        "w2": stack(lambda: nrm((FFN, HIDDEN))).astype(jnp.bfloat16),
        "lbias": lbias,
        "wp": nrm((HIDDEN, HIDDEN)).astype(jnp.bfloat16),
        "wd": nrm((HIDDEN, NUM_CLASSES)).astype(jnp.bfloat16),
        "head_b": jnp.zeros((2, HIDDEN), jnp.float32),    # row 0: pooler bias, row 1: cls bias (padded)
    }


# ----------------------------- forward --------------------------------------------


def _model_forward(params, token_ids, segment_ids, labels):
    b, s = token_ids.shape
    kernel = functools.partial(_bert_loss_kernel, batch=b, seq=s)
    loss = pl.pallas_call(
        kernel,
        out_shape=jax.ShapeDtypeStruct((1, 1), jnp.float32),
        in_specs=[_SMEM, _SMEM, _SMEM] + [_VMEM] * 10,
        out_specs=_VMEM,
        scratch_shapes=[pltpu.VMEM((b * s, HIDDEN), jnp.float32)],
    )(token_ids.reshape(-1).astype(jnp.int32),
      segment_ids.reshape(-1).astype(jnp.int32),
      labels.astype(jnp.int32),
      params["emb_tbl"], params["emb_ln"],
      params["wqkv"], params["wo"], params["w1"], params["w2"], params["lbias"],
      params["wp"], params["wd"], params["head_b"])
    return loss[0, 0]


model_forward = jax.jit(_model_forward)


# ----------------------------- main -----------------------------------------------


if __name__ == "__main__":
    key = jax.random.PRNGKey(0)
    k_params, k_tok, k_seg, k_lab = jax.random.split(key, 4)

    B, S = 2, 8
    params = init_params(k_params)
    token_ids = jax.random.randint(k_tok, (B, S), 0, VOCAB, dtype=jnp.int32)
    segment_ids = jax.random.randint(k_seg, (B, S), 0, TYPE_VOCAB, dtype=jnp.int32)
    labels = jax.random.randint(k_lab, (B,), 0, NUM_CLASSES, dtype=jnp.int32)

    loss = model_forward(params, token_ids, segment_ids, labels)
    jax.block_until_ready(loss)
    assert loss.shape == () and bool(jnp.isfinite(loss))
    print("KERNEL_OK")
</pallas_src>

<mosaic_0001>
module attributes {stable_mosaic.version = 11 : i64} {
  func.func @_bert_loss_kernel(%arg0: memref<16xi32, #tpu.memory_space<smem>>, %arg1: memref<16xi32, #tpu.memory_space<smem>>, %arg2: memref<2xi32, #tpu.memory_space<smem>>, %arg3: memref<134x32xf32, #tpu.memory_space<vmem>>, %arg4: memref<2x32xf32, #tpu.memory_space<vmem>>, %arg5: memref<2x32x96xbf16, #tpu.memory_space<vmem>>, %arg6: memref<2x32x32xbf16, #tpu.memory_space<vmem>>, %arg7: memref<2x32x128xbf16, #tpu.memory_space<vmem>>, %arg8: memref<2x128x32xbf16, #tpu.memory_space<vmem>>, %arg9: memref<2x8x128xf32, #tpu.memory_space<vmem>>, %arg10: memref<32x32xbf16, #tpu.memory_space<vmem>>, %arg11: memref<32x2xbf16, #tpu.memory_space<vmem>>, %arg12: memref<2x32xf32, #tpu.memory_space<vmem>>, %arg13: memref<1x1xf32, #tpu.memory_space<vmem>>, %arg14: memref<16x32xf32, #tpu.memory_space<vmem>>) attributes {dimension_semantics = [], scalar_prefetch = 0 : i64, scratch_operands = 1 : i64, tpu.core_type = #tpu.core_type<tc>} {
    %c0 = arith.constant 0 : index
    %0 = memref.load %arg0[%c0] : memref<16xi32, #tpu.memory_space<smem>>
    %c0_0 = arith.constant 0 : index
    %1 = memref.load %arg1[%c0_0] : memref<16xi32, #tpu.memory_space<smem>>
    %2 = arith.index_cast %0 : i32 to index
    %c0_1 = arith.constant 0 : index
    %3 = vector.load %arg3[%2, %c0_1] : memref<134x32xf32, #tpu.memory_space<vmem>>, vector<1x32xf32>
    %c100 = arith.constant 100 : index
    %c0_2 = arith.constant 0 : index
    %4 = vector.load %arg3[%c100, %c0_2] : memref<134x32xf32, #tpu.memory_space<vmem>>, vector<1x32xf32>
    %5 = arith.addf %3, %4 : vector<1x32xf32>
    %c132_i32 = arith.constant 132 : i32
    %6 = arith.addi %c132_i32, %1 : i32
    %7 = arith.index_cast %6 : i32 to index
    %c0_3 = arith.constant 0 : index
    %8 = vector.load %arg3[%7, %c0_3] : memref<134x32xf32, #tpu.memory_space<vmem>>, vector<1x32xf32>
    %9 = arith.addf %5, %8 : vector<1x32xf32>
    %c0_4 = arith.constant 0 : index
    %c0_5 = arith.constant 0 : index
    %10 = vector.load %arg14[%c0_4, %c0_5] : memref<16x32xf32, #tpu.memory_space<vmem>>, vector<1x32xf32>
    tpu.vector_store %arg14[%c0_4, %c0_5], %9 {strides = array<i32>} : memref<16x32xf32, #tpu.memory_space<vmem>>, vector<1x32xf32>,
    %c1 = arith.constant 1 : index
    %11 = memref.load %arg0[%c1] : memref<16xi32, #tpu.memory_space<smem>>
    %c1_6 = arith.constant 1 : index
    %12 = memref.load %arg1[%c1_6] : memref<16xi32, #tpu.memory_space<smem>>
    %13 = arith.index_cast %11 : i32 to index
    %c0_7 = arith.constant 0 : index
    %14 = vector.load %arg3[%13, %c0_7] : memref<134x32xf32, #tpu.memory_space<vmem>>, vector<1x32xf32>
    %c101 = arith.constant 101 : index
    %c0_8 = arith.constant 0 : index
    %15 = vector.load %arg3[%c101, %c0_8] : memref<134x32xf32, #tpu.memory_space<vmem>>, vector<1x32xf32>
    %16 = arith.addf %14, %15 : vector<1x32xf32>
    %c132_i32_9 = arith.constant 132 : i32
    %17 = arith.addi %c132_i32_9, %12 : i32
    %18 = arith.index_cast %17 : i32 to index
    %c0_10 = arith.constant 0 : index
    %19 = vector.load %arg3[%18, %c0_10] : memref<134x32xf32, #tpu.memory_space<vmem>>, vector<1x32xf32>
    %20 = arith.addf %16, %19 : vector<1x32xf32>
    %c1_11 = arith.constant 1 : index
    %c0_12 = arith.constant 0 : index
    %21 = vector.load %arg14[%c1_11, %c0_12] : memref<16x32xf32, #tpu.memory_space<vmem>>, vector<1x32xf32>
    tpu.vector_store %arg14[%c1_11, %c0_12], %20 {strides = array<i32>} : memref<16x32xf32, #tpu.memory_space<vmem>>, vector<1x32xf32>,
    %c2 = arith.constant 2 : index
    %22 = memref.load %arg0[%c2] : memref<16xi32, #tpu.memory_space<smem>>
    %c2_13 = arith.constant 2 : index
    %23 = memref.load %arg1[%c2_13] : memref<16xi32, #tpu.memory_space<smem>>
    %24 = arith.index_cast %22 : i32 to index
    %c0_14 = arith.constant 0 : index
    %25 = vector.load %arg3[%24, %c0_14] : memref<134x32xf32, #tpu.memory_space<vmem>>, vector<1x32xf32>
    %c102 = arith.constant 102 : index
    %c0_15 = arith.constant 0 : index
    %26 = vector.load %arg3[%c102, %c0_15] : memref<134x32xf32, #tpu.memory_space<vmem>>, vector<1x32xf32>
    %27 = arith.addf %25, %26 : vector<1x32xf32>
    %c132_i32_16 = arith.constant 132 : i32
    %28 = arith.addi %c132_i32_16, %23 : i32
    %29 = arith.index_cast %28 : i32 to index
    %c0_17 = arith.constant 0 : index
    %30 = vector.load %arg3[%29, %c0_17] : memref<134x32xf32, #tpu.memory_space<vmem>>, vector<1x32xf32>
    %31 = arith.addf %27, %30 : vector<1x32xf32>
    %c2_18 = arith.constant 2 : index
    %c0_19 = arith.constant 0 : index
    %32 = vector.load %arg14[%c2_18, %c0_19] : memref<16x32xf32, #tpu.memory_space<vmem>>, vector<1x32xf32>
    tpu.vector_store %arg14[%c2_18, %c0_19], %31 {strides = array<i32>} : memref<16x32xf32, #tpu.memory_space<vmem>>, vector<1x32xf32>,
    %c3 = arith.constant 3 : index
    %33 = memref.load %arg0[%c3] : memref<16xi32, #tpu.memory_space<smem>>
    %c3_20 = arith.constant 3 : index
    %34 = memref.load %arg1[%c3_20] : memref<16xi32, #tpu.memory_space<smem>>
    %35 = arith.index_cast %33 : i32 to index
    %c0_21 = arith.constant 0 : index
    %36 = vector.load %arg3[%35, %c0_21] : memref<134x32xf32, #tpu.memory_space<vmem>>, vector<1x32xf32>
    %c103 = arith.constant 103 : index
    %c0_22 = arith.constant 0 : index
    %37 = vector.load %arg3[%c103, %c0_22] : memref<134x32xf32, #tpu.memory_space<vmem>>, vector<1x32xf32>
    %38 = arith.addf %36, %37 : vector<1x32xf32>
    %c132_i32_23 = arith.constant 132 : i32
    %39 = arith.addi %c132_i32_23, %34 : i32
    %40 = arith.index_cast %39 : i32 to index
    %c0_24 = arith.constant 0 : index
    %41 = vector.load %arg3[%40, %c0_24] : memref<134x32xf32, #tpu.memory_space<vmem>>, vector<1x32xf32>
    %42 = arith.addf %38, %41 : vector<1x32xf32>
    %c3_25 = arith.constant 3 : index
    %c0_26 = arith.constant 0 : index
    %43 = vector.load %arg14[%c3_25, %c0_26] : memref<16x32xf32, #tpu.memory_space<vmem>>, vector<1x32xf32>
    tpu.vector_store %arg14[%c3_25, %c0_26], %42 {strides = array<i32>} : memref<16x32xf32, #tpu.memory_space<vmem>>, vector<1x32xf32>,
    %c4 = arith.constant 4 : index
    %44 = memref.load %arg0[%c4] : memref<16xi32, #tpu.memory_space<smem>>
    %c4_27 = arith.constant 4 : index
    %45 = memref.load %arg1[%c4_27] : memref<16xi32, #tpu.memory_space<smem>>
    %46 = arith.index_cast %44 : i32 to index
    %c0_28 = arith.constant 0 : index
    %47 = vector.load %arg3[%46, %c0_28] : memref<134x32xf32, #tpu.memory_space<vmem>>, vector<1x32xf32>
    %c104 = arith.constant 104 : index
    %c0_29 = arith.constant 0 : index
    %48 = vector.load %arg3[%c104, %c0_29] : memref<134x32xf32, #tpu.memory_space<vmem>>, vector<1x32xf32>
    %49 = arith.addf %47, %48 : vector<1x32xf32>
    %c132_i32_30 = arith.constant 132 : i32
    %50 = arith.addi %c132_i32_30, %45 : i32
    %51 = arith.index_cast %50 : i32 to index
    %c0_31 = arith.constant 0 : index
    %52 = vector.load %arg3[%51, %c0_31] : memref<134x32xf32, #tpu.memory_space<vmem>>, vector<1x32xf32>
    %53 = arith.addf %49, %52 : vector<1x32xf32>
    %c4_32 = arith.constant 4 : index
    %c0_33 = arith.constant 0 : index
    %54 = vector.load %arg14[%c4_32, %c0_33] : memref<16x32xf32, #tpu.memory_space<vmem>>, vector<1x32xf32>
    tpu.vector_store %arg14[%c4_32, %c0_33], %53 {strides = array<i32>} : memref<16x32xf32, #tpu.memory_space<vmem>>, vector<1x32xf32>,
    %c5 = arith.constant 5 : index
    %55 = memref.load %arg0[%c5] : memref<16xi32, #tpu.memory_space<smem>>
    %c5_34 = arith.constant 5 : index
    %56 = memref.load %arg1[%c5_34] : memref<16xi32, #tpu.memory_space<smem>>
    %57 = arith.index_cast %55 : i32 to index
    %c0_35 = arith.constant 0 : index
    %58 = vector.load %arg3[%57, %c0_35] : memref<134x32xf32, #tpu.memory_space<vmem>>, vector<1x32xf32>
    %c105 = arith.constant 105 : index
    %c0_36 = arith.constant 0 : index
    %59 = vector.load %arg3[%c105, %c0_36] : memref<134x32xf32, #tpu.memory_space<vmem>>, vector<1x32xf32>
    %60 = arith.addf %58, %59 : vector<1x32xf32>
    %c132_i32_37 = arith.constant 132 : i32
    %61 = arith.addi %c132_i32_37, %56 : i32
    %62 = arith.index_cast %61 : i32 to index
    %c0_38 = arith.constant 0 : index
    %63 = vector.load %arg3[%62, %c0_38] : memref<134x32xf32, #tpu.memory_space<vmem>>, vector<1x32xf32>
    %64 = arith.addf %60, %63 : vector<1x32xf32>
    %c5_39 = arith.constant 5 : index
    %c0_40 = arith.constant 0 : index
    %65 = vector.load %arg14[%c5_39, %c0_40] : memref<16x32xf32, #tpu.memory_space<vmem>>, vector<1x32xf32>
    tpu.vector_store %arg14[%c5_39, %c0_40], %64 {strides = array<i32>} : memref<16x32xf32, #tpu.memory_space<vmem>>, vector<1x32xf32>,
    %c6 = arith.constant 6 : index
    %66 = memref.load %arg0[%c6] : memref<16xi32, #tpu.memory_space<smem>>
    %c6_41 = arith.constant 6 : index
    %67 = memref.load %arg1[%c6_41] : memref<16xi32, #tpu.memory_space<smem>>
    %68 = arith.index_cast %66 : i32 to index
    %c0_42 = arith.constant 0 : index
    %69 = vector.load %arg3[%68, %c0_42] : memref<134x32xf32, #tpu.memory_space<vmem>>, vector<1x32xf32>
    %c106 = arith.constant 106 : index
    %c0_43 = arith.constant 0 : index
    %70 = vector.load %arg3[%c106, %c0_43] : memref<134x32xf32, #tpu.memory_space<vmem>>, vector<1x32xf32>
    %71 = arith.addf %69, %70 : vector<1x32xf32>
    %c132_i32_44 = arith.constant 132 : i32
    %72 = arith.addi %c132_i32_44, %67 : i32
    %73 = arith.index_cast %72 : i32 to index
    %c0_45 = arith.constant 0 : index
    %74 = vector.load %arg3[%73, %c0_45] : memref<134x32xf32, #tpu.memory_space<vmem>>, vector<1x32xf32>
    %75 = arith.addf %71, %74 : vector<1x32xf32>
    %c6_46 = arith.constant 6 : index
    %c0_47 = arith.constant 0 : index
    %76 = vector.load %arg14[%c6_46, %c0_47] : memref<16x32xf32, #tpu.memory_space<vmem>>, vector<1x32xf32>
    tpu.vector_store %arg14[%c6_46, %c0_47], %75 {strides = array<i32>} : memref<16x32xf32, #tpu.memory_space<vmem>>, vector<1x32xf32>,
    %c7 = arith.constant 7 : index
    %77 = memref.load %arg0[%c7] : memref<16xi32, #tpu.memory_space<smem>>
    %c7_48 = arith.constant 7 : index
    %78 = memref.load %arg1[%c7_48] : memref<16xi32, #tpu.memory_space<smem>>
    %79 = arith.index_cast %77 : i32 to index
    %c0_49 = arith.constant 0 : index
    %80 = vector.load %arg3[%79, %c0_49] : memref<134x32xf32, #tpu.memory_space<vmem>>, vector<1x32xf32>
    %c107 = arith.constant 107 : index
    %c0_50 = arith.constant 0 : index
    %81 = vector.load %arg3[%c107, %c0_50] : memref<134x32xf32, #tpu.memory_space<vmem>>, vector<1x32xf32>
    %82 = arith.addf %80, %81 : vector<1x32xf32>
    %c132_i32_51 = arith.constant 132 : i32
    %83 = arith.addi %c132_i32_51, %78 : i32
    %84 = arith.index_cast %83 : i32 to index
    %c0_52 = arith.constant 0 : index
    %85 = vector.load %arg3[%84, %c0_52] : memref<134x32xf32, #tpu.memory_space<vmem>>, vector<1x32xf32>
    %86 = arith.addf %82, %85 : vector<1x32xf32>
    %c7_53 = arith.constant 7 : index
    %c0_54 = arith.constant 0 : index
    %87 = vector.load %arg14[%c7_53, %c0_54] : memref<16x32xf32, #tpu.memory_space<vmem>>, vector<1x32xf32>
    tpu.vector_store %arg14[%c7_53, %c0_54], %86 {strides = array<i32>} : memref<16x32xf32, #tpu.memory_space<vmem>>, vector<1x32xf32>,
    %c8 = arith.constant 8 : index
    %88 = memref.load %arg0[%c8] : memref<16xi32, #tpu.memory_space<smem>>
    %c8_55 = arith.constant 8 : index
    %89 = memref.load %arg1[%c8_55] : memref<16xi32, #tpu.memory_space<smem>>
    %90 = arith.index_cast %88 : i32 to index
    %c0_56 = arith.constant 0 : index
    %91 = vector.load %arg3[%90, %c0_56] : memref<134x32xf32, #tpu.memory_space<vmem>>, vector<1x32xf32>
    %c100_57 = arith.constant 100 : index
    %c0_58 = arith.constant 0 : index
    %92 = vector.load %arg3[%c100_57, %c0_58] : memref<134x32xf32, #tpu.memory_space<vmem>>, vector<1x32xf32>
    %93 = arith.addf %91, %92 : vector<1x32xf32>
    %c132_i32_59 = arith.constant 132 : i32
    %94 = arith.addi %c132_i32_59, %89 : i32
    %95 = arith.index_cast %94 : i32 to index
    %c0_60 = arith.constant 0 : index
    %96 = vector.load %arg3[%95, %c0_60] : memref<134x32xf32, #tpu.memory_space<vmem>>, vector<1x32xf32>
    %97 = arith.addf %93, %96 : vector<1x32xf32>
    %c8_61 = arith.constant 8 : index
    %c0_62 = arith.constant 0 : index
    %98 = vector.load %arg14[%c8_61, %c0_62] : memref<16x32xf32, #tpu.memory_space<vmem>>, vector<1x32xf32>
    tpu.vector_store %arg14[%c8_61, %c0_62], %97 {strides = array<i32>} : memref<16x32xf32, #tpu.memory_space<vmem>>, vector<1x32xf32>,
    %c9 = arith.constant 9 : index
    %99 = memref.load %arg0[%c9] : memref<16xi32, #tpu.memory_space<smem>>
    %c9_63 = arith.constant 9 : index
    %100 = memref.load %arg1[%c9_63] : memref<16xi32, #tpu.memory_space<smem>>
    %101 = arith.index_cast %99 : i32 to index
    %c0_64 = arith.constant 0 : index
    %102 = vector.load %arg3[%101, %c0_64] : memref<134x32xf32, #tpu.memory_space<vmem>>, vector<1x32xf32>
    %c101_65 = arith.constant 101 : index
    %c0_66 = arith.constant 0 : index
    %103 = vector.load %arg3[%c101_65, %c0_66] : memref<134x32xf32, #tpu.memory_space<vmem>>, vector<1x32xf32>
    %104 = arith.addf %102, %103 : vector<1x32xf32>
    %c132_i32_67 = arith.constant 132 : i32
    %105 = arith.addi %c132_i32_67, %100 : i32
    %106 = arith.index_cast %105 : i32 to index
    %c0_68 = arith.constant 0 : index
    %107 = vector.load %arg3[%106, %c0_68] : memref<134x32xf32, #tpu.memory_space<vmem>>, vector<1x32xf32>
    %108 = arith.addf %104, %107 : vector<1x32xf32>
    %c9_69 = arith.constant 9 : index
    %c0_70 = arith.constant 0 : index
    %109 = vector.load %arg14[%c9_69, %c0_70] : memref<16x32xf32, #tpu.memory_space<vmem>>, vector<1x32xf32>
    tpu.vector_store %arg14[%c9_69, %c0_70], %108 {strides = array<i32>} : memref<16x32xf32, #tpu.memory_space<vmem>>, vector<1x32xf32>,
    %c10 = arith.constant 10 : index
    %110 = memref.load %arg0[%c10] : memref<16xi32, #tpu.memory_space<smem>>
    %c10_71 = arith.constant 10 : index
    %111 = memref.load %arg1[%c10_71] : memref<16xi32, #tpu.memory_space<smem>>
    %112 = arith.index_cast %110 : i32 to index
    %c0_72 = arith.constant 0 : index
    %113 = vector.load %arg3[%112, %c0_72] : memref<134x32xf32, #tpu.memory_space<vmem>>, vector<1x32xf32>
    %c102_73 = arith.constant 102 : index
    %c0_74 = arith.constant 0 : index
    %114 = vector.load %arg3[%c102_73, %c0_74] : memref<134x32xf32, #tpu.memory_space<vmem>>, vector<1x32xf32>
    %115 = arith.addf %113, %114 : vector<1x32xf32>
    %c132_i32_75 = arith.constant 132 : i32
    %116 = arith.addi %c132_i32_75, %111 : i32
    %117 = arith.index_cast %116 : i32 to index
    %c0_76 = arith.constant 0 : index
    %118 = vector.load %arg3[%117, %c0_76] : memref<134x32xf32, #tpu.memory_space<vmem>>, vector<1x32xf32>
    %119 = arith.addf %115, %118 : vector<1x32xf32>
    %c10_77 = arith.constant 10 : index
    %c0_78 = arith.constant 0 : index
    %120 = vector.load %arg14[%c10_77, %c0_78] : memref<16x32xf32, #tpu.memory_space<vmem>>, vector<1x32xf32>
    tpu.vector_store %arg14[%c10_77, %c0_78], %119 {strides = array<i32>} : memref<16x32xf32, #tpu.memory_space<vmem>>, vector<1x32xf32>,
    %c11 = arith.constant 11 : index
    %121 = memref.load %arg0[%c11] : memref<16xi32, #tpu.memory_space<smem>>
    %c11_79 = arith.constant 11 : index
    %122 = memref.load %arg1[%c11_79] : memref<16xi32, #tpu.memory_space<smem>>
    %123 = arith.index_cast %121 : i32 to index
    %c0_80 = arith.constant 0 : index
    %124 = vector.load %arg3[%123, %c0_80] : memref<134x32xf32, #tpu.memory_space<vmem>>, vector<1x32xf32>
    %c103_81 = arith.constant 103 : index
    %c0_82 = arith.constant 0 : index
    %125 = vector.load %arg3[%c103_81, %c0_82] : memref<134x32xf32, #tpu.memory_space<vmem>>, vector<1x32xf32>
    %126 = arith.addf %124, %125 : vector<1x32xf32>
    %c132_i32_83 = arith.constant 132 : i32
    %127 = arith.addi %c132_i32_83, %122 : i32
    %128 = arith.index_cast %127 : i32 to index
    %c0_84 = arith.constant 0 : index
    %129 = vector.load %arg3[%128, %c0_84] : memref<134x32xf32, #tpu.memory_space<vmem>>, vector<1x32xf32>
    %130 = arith.addf %126, %129 : vector<1x32xf32>
    %c11_85 = arith.constant 11 : index
    %c0_86 = arith.constant 0 : index
    %131 = vector.load %arg14[%c11_85, %c0_86] : memref<16x32xf32, #tpu.memory_space<vmem>>, vector<1x32xf32>
    tpu.vector_store %arg14[%c11_85, %c0_86], %130 {strides = array<i32>} : memref<16x32xf32, #tpu.memory_space<vmem>>, vector<1x32xf32>,
    %c12 = arith.constant 12 : index
    %132 = memref.load %arg0[%c12] : memref<16xi32, #tpu.memory_space<smem>>
    %c12_87 = arith.constant 12 : index
    %133 = memref.load %arg1[%c12_87] : memref<16xi32, #tpu.memory_space<smem>>
    %134 = arith.index_cast %132 : i32 to index
    %c0_88 = arith.constant 0 : index
    %135 = vector.load %arg3[%134, %c0_88] : memref<134x32xf32, #tpu.memory_space<vmem>>, vector<1x32xf32>
    %c104_89 = arith.constant 104 : index
    %c0_90 = arith.constant 0 : index
    %136 = vector.load %arg3[%c104_89, %c0_90] : memref<134x32xf32, #tpu.memory_space<vmem>>, vector<1x32xf32>
    %137 = arith.addf %135, %136 : vector<1x32xf32>
    %c132_i32_91 = arith.constant 132 : i32
    %138 = arith.addi %c132_i32_91, %133 : i32
    %139 = arith.index_cast %138 : i32 to index
    %c0_92 = arith.constant 0 : index
    %140 = vector.load %arg3[%139, %c0_92] : memref<134x32xf32, #tpu.memory_space<vmem>>, vector<1x32xf32>
    %141 = arith.addf %137, %140 : vector<1x32xf32>
    %c12_93 = arith.constant 12 : index
    %c0_94 = arith.constant 0 : index
    %142 = vector.load %arg14[%c12_93, %c0_94] : memref<16x32xf32, #tpu.memory_space<vmem>>, vector<1x32xf32>
    tpu.vector_store %arg14[%c12_93, %c0_94], %141 {strides = array<i32>} : memref<16x32xf32, #tpu.memory_space<vmem>>, vector<1x32xf32>,
    %c13 = arith.constant 13 : index
    %143 = memref.load %arg0[%c13] : memref<16xi32, #tpu.memory_space<smem>>
    %c13_95 = arith.constant 13 : index
    %144 = memref.load %arg1[%c13_95] : memref<16xi32, #tpu.memory_space<smem>>
    %145 = arith.index_cast %143 : i32 to index
    %c0_96 = arith.constant 0 : index
    %146 = vector.load %arg3[%145, %c0_96] : memref<134x32xf32, #tpu.memory_space<vmem>>, vector<1x32xf32>
    %c105_97 = arith.constant 105 : index
    %c0_98 = arith.constant 0 : index
    %147 = vector.load %arg3[%c105_97, %c0_98] : memref<134x32xf32, #tpu.memory_space<vmem>>, vector<1x32xf32>
    %148 = arith.addf %146, %147 : vector<1x32xf32>
    %c132_i32_99 = arith.constant 132 : i32
    %149 = arith.addi %c132_i32_99, %144 : i32
    %150 = arith.index_cast %149 : i32 to index
    %c0_100 = arith.constant 0 : index
    %151 = vector.load %arg3[%150, %c0_100] : memref<134x32xf32, #tpu.memory_space<vmem>>, vector<1x32xf32>
    %152 = arith.addf %148, %151 : vector<1x32xf32>
    %c13_101 = arith.constant 13 : index
    %c0_102 = arith.constant 0 : index
    %153 = vector.load %arg14[%c13_101, %c0_102] : memref<16x32xf32, #tpu.memory_space<vmem>>, vector<1x32xf32>
    tpu.vector_store %arg14[%c13_101, %c0_102], %152 {strides = array<i32>} : memref<16x32xf32, #tpu.memory_space<vmem>>, vector<1x32xf32>,
    %c14 = arith.constant 14 : index
    %154 = memref.load %arg0[%c14] : memref<16xi32, #tpu.memory_space<smem>>
    %c14_103 = arith.constant 14 : index
    %155 = memref.load %arg1[%c14_103] : memref<16xi32, #tpu.memory_space<smem>>
    %156 = arith.index_cast %154 : i32 to index
    %c0_104 = arith.constant 0 : index
    %157 = vector.load %arg3[%156, %c0_104] : memref<134x32xf32, #tpu.memory_space<vmem>>, vector<1x32xf32>
    %c106_105 = arith.constant 106 : index
    %c0_106 = arith.constant 0 : index
    %158 = vector.load %arg3[%c106_105, %c0_106] : memref<134x32xf32, #tpu.memory_space<vmem>>, vector<1x32xf32>
    %159 = arith.addf %157, %158 : vector<1x32xf32>
    %c132_i32_107 = arith.constant 132 : i32
    %160 = arith.addi %c132_i32_107, %155 : i32
    %161 = arith.index_cast %160 : i32 to index
    %c0_108 = arith.constant 0 : index
    %162 = vector.load %arg3[%161, %c0_108] : memref<134x32xf32, #tpu.memory_space<vmem>>, vector<1x32xf32>
    %163 = arith.addf %159, %162 : vector<1x32xf32>
    %c14_109 = arith.constant 14 : index
    %c0_110 = arith.constant 0 : index
    %164 = vector.load %arg14[%c14_109, %c0_110] : memref<16x32xf32, #tpu.memory_space<vmem>>, vector<1x32xf32>
    tpu.vector_store %arg14[%c14_109, %c0_110], %163 {strides = array<i32>} : memref<16x32xf32, #tpu.memory_space<vmem>>, vector<1x32xf32>,
    %c15 = arith.constant 15 : index
    %165 = memref.load %arg0[%c15] : memref<16xi32, #tpu.memory_space<smem>>
    %c15_111 = arith.constant 15 : index
    %166 = memref.load %arg1[%c15_111] : memref<16xi32, #tpu.memory_space<smem>>
    %167 = arith.index_cast %165 : i32 to index
    %c0_112 = arith.constant 0 : index
    %168 = vector.load %arg3[%167, %c0_112] : memref<134x32xf32, #tpu.memory_space<vmem>>, vector<1x32xf32>
    %c107_113 = arith.constant 107 : index
    %c0_114 = arith.constant 0 : index
    %169 = vector.load %arg3[%c107_113, %c0_114] : memref<134x32xf32, #tpu.memory_space<vmem>>, vector<1x32xf32>
    %170 = arith.addf %168, %169 : vector<1x32xf32>
    %c132_i32_115 = arith.constant 132 : i32
    %171 = arith.addi %c132_i32_115, %166 : i32
    %172 = arith.index_cast %171 : i32 to index
    %c0_116 = arith.constant 0 : index
    %173 = vector.load %arg3[%172, %c0_116] : memref<134x32xf32, #tpu.memory_space<vmem>>, vector<1x32xf32>
    %174 = arith.addf %170, %173 : vector<1x32xf32>
    %c15_117 = arith.constant 15 : index
    %c0_118 = arith.constant 0 : index
    %175 = vector.load %arg14[%c15_117, %c0_118] : memref<16x32xf32, #tpu.memory_space<vmem>>, vector<1x32xf32>
    tpu.vector_store %arg14[%c15_117, %c0_118], %174 {strides = array<i32>} : memref<16x32xf32, #tpu.memory_space<vmem>>, vector<1x32xf32>,
    %c0_119 = arith.constant 0 : index
    %c0_120 = arith.constant 0 : index
    %176 = vector.load %arg14[%c0_119, %c0_120] : memref<16x32xf32, #tpu.memory_space<vmem>>, vector<16x32xf32>
    %c0_121 = arith.constant 0 : index
    %c0_122 = arith.constant 0 : index
    %177 = vector.load %arg4[%c0_121, %c0_122] : memref<2x32xf32, #tpu.memory_space<vmem>>, vector<1x32xf32>
    %c1_123 = arith.constant 1 : index
    %c0_124 = arith.constant 0 : index
    %178 = vector.load %arg4[%c1_123, %c0_124] : memref<2x32xf32, #tpu.memory_space<vmem>>, vector<1x32xf32>
    %cst = arith.constant dense<0.000000e+00> : vector<16xf32>
    %179 = vector.multi_reduction <add>, %176, %cst [1] : vector<16x32xf32> to vector<16xf32>
    %180 = vector.shape_cast %179 : vector<16xf32> to vector<16x1xf32>
    %cst_125 = arith.constant 3.200000e+01 : f32
    %181 = vector.broadcast %cst_125 : f32 to vector<16x1xf32>
    %182 = arith.divf %180, %181 : vector<16x1xf32>
    %183 = vector.broadcast %182 : vector<16x1xf32> to vector<16x32xf32>
    %184 = arith.subf %176, %183 : vector<16x32xf32>
    %185 = arith.mulf %184, %184 : vector<16x32xf32>
    %cst_126 = arith.constant dense<0.000000e+00> : vector<16xf32>
    %186 = vector.multi_reduction <add>, %185, %cst_126 [1] : vector<16x32xf32> to vector<16xf32>
    %187 = vector.shape_cast %186 : vector<16xf32> to vector<16x1xf32>
    %cst_127 = arith.constant 3.200000e+01 : f32
    %188 = vector.broadcast %cst_127 : f32 to vector<16x1xf32>
    %189 = arith.divf %187, %188 : vector<16x1xf32>
    %cst_128 = arith.constant 9.99999996E-13 : f32
    %190 = vector.broadcast %cst_128 : f32 to vector<16x1xf32>
    %191 = arith.addf %189, %190 : vector<16x1xf32>
    %192 = math.rsqrt %191 : vector<16x1xf32>
    %193 = vector.broadcast %192 : vector<16x1xf32> to vector<16x32xf32>
    %194 = arith.mulf %184, %193 : vector<16x32xf32>
    %195 = vector.broadcast %177 : vector<1x32xf32> to vector<16x32xf32>
    %196 = arith.mulf %194, %195 : vector<16x32xf32>
    %197 = vector.broadcast %178 : vector<1x32xf32> to vector<16x32xf32>
    %198 = arith.addf %196, %197 : vector<16x32xf32>
    %c0_i32 = arith.constant 0 : i32
    %c2_i32 = arith.constant 2 : i32
    %199 = arith.addi %c0_i32, %c2_i32 : i32
    %c1_i32 = arith.constant 1 : i32
    %200 = scf.for %arg15 = %c0_i32 to %199 step %c1_i32 iter_args(%arg16 = %198) -> (vector<16x32xf32>)  : i32 {
      %260 = arith.index_cast %arg15 : i32 to index
      %c0_154 = arith.constant 0 : index
      %c0_155 = arith.constant 0 : index
      %261 = vector.load %arg9[%260, %c0_154, %c0_155] : memref<2x8x128xf32, #tpu.memory_space<vmem>>, vector<1x8x128xf32>
      %262 = vector.shape_cast %261 : vector<1x8x128xf32> to vector<8x128xf32>
      %263 = vector.extract_strided_slice %262 {offsets = [0, 0], sizes = [1, 96], strides = [1, 1]} : vector<8x128xf32> to vector<1x96xf32>
      %264 = vector.extract_strided_slice %262 {offsets = [1, 0], sizes = [1, 128], strides = [1, 1]} : vector<8x128xf32> to vector<1x128xf32>
      %265 = vector.extract_strided_slice %262 {offsets = [2, 0], sizes = [1, 32], strides = [1, 1]} : vector<8x128xf32> to vector<1x32xf32>
      %266 = vector.extract_strided_slice %262 {offsets = [3, 0], sizes = [1, 32], strides = [1, 1]} : vector<8x128xf32> to vector<1x32xf32>
      %267 = vector.extract_strided_slice %262 {offsets = [4, 0], sizes = [1, 32], strides = [1, 1]} : vector<8x128xf32> to vector<1x32xf32>
      %268 = vector.extract_strided_slice %262 {offsets = [5, 0], sizes = [1, 32], strides = [1, 1]} : vector<8x128xf32> to vector<1x32xf32>
      %269 = vector.extract_strided_slice %262 {offsets = [6, 0], sizes = [1, 32], strides = [1, 1]} : vector<8x128xf32> to vector<1x32xf32>
      %270 = vector.extract_strided_slice %262 {offsets = [7, 0], sizes = [1, 32], strides = [1, 1]} : vector<8x128xf32> to vector<1x32xf32>
      %271 = arith.truncf %arg16 : vector<16x32xf32> to vector<16x32xbf16>
      %272 = arith.index_cast %arg15 : i32 to index
      %c0_156 = arith.constant 0 : index
      %c0_157 = arith.constant 0 : index
      %273 = vector.load %arg5[%272, %c0_156, %c0_157] : memref<2x32x96xbf16, #tpu.memory_space<vmem>>, vector<1x32x96xbf16>
      %274 = vector.shape_cast %273 : vector<1x32x96xbf16> to vector<32x96xbf16>
      %cst_158 = arith.constant dense<0.000000e+00> : vector<16x96xf32>
      %275 = tpu.matmul %271, %274, %cst_158 {dimension_numbers = #tpu.dot_dimension_numbers<[1], [0], [0], [1], [0, 0, 1, 1], [], []>} : vector<16x32xbf16>, vector<32x96xbf16>, vector<16x96xf32> -> vector<16x96xf32>
      %276 = vector.broadcast %263 : vector<1x96xf32> to vector<16x96xf32>
      %277 = arith.addf %275, %276 : vector<16x96xf32>
      %278 = vector.extract_strided_slice %277 {offsets = [0, 0], sizes = [16, 8], strides = [1, 1]} : vector<16x96xf32> to vector<16x8xf32>
      %279 = vector.shape_cast %278 : vector<16x8xf32> to vector<2x8x8xf32>
      %280 = arith.truncf %279 : vector<2x8x8xf32> to vector<2x8x8xbf16>
      %281 = vector.extract_strided_slice %277 {offsets = [0, 32], sizes = [16, 8], strides = [1, 1]} : vector<16x96xf32> to vector<16x8xf32>
      %282 = vector.shape_cast %281 : vector<16x8xf32> to vector<2x8x8xf32>
      %283 = arith.truncf %282 : vector<2x8x8xf32> to vector<2x8x8xbf16>
      %284 = vector.extract_strided_slice %277 {offsets = [0, 64], sizes = [16, 8], strides = [1, 1]} : vector<16x96xf32> to vector<16x8xf32>
      %285 = vector.shape_cast %284 : vector<16x8xf32> to vector<2x8x8xf32>
      %286 = arith.truncf %285 : vector<2x8x8xf32> to vector<2x8x8xbf16>
      "tpu.trace_start"() <{level = 10 : i32, message = "bqd,bkd->bqk"}> : () -> ()
      %cst_159 = arith.constant dense<0.000000e+00> : vector<2x8x8xf32>
      %287 = tpu.matmul %280, %283, %cst_159 {dimension_numbers = #tpu.dot_dimension_numbers<[2], [2], [1], [1], [0, 0, 0, 1, 1, 1], [0], [0]>} : vector<2x8x8xbf16>, vector<2x8x8xbf16>, vector<2x8x8xf32> -> vector<2x8x8xf32>
      "tpu.trace_stop"() : () -> ()
      %cst_160 = arith.constant dense<0xFF800000> : vector<2x8xf32>
      %288 = vector.multi_reduction <maximumf>, %287, %cst_160 [2] : vector<2x8x8xf32> to vector<2x8xf32>
      %289 = vector.shape_cast %288 : vector<2x8xf32> to vector<2x8x1xf32>
      %290 = vector.broadcast %289 : vector<2x8x1xf32> to vector<2x8x8xf32>
      %291 = arith.subf %287, %290 : vector<2x8x8xf32>
      %292 = math.exp %291 : vector<2x8x8xf32>
      %cst_161 = arith.constant dense<0.000000e+00> : vector<2x8xf32>
      %293 = vector.multi_reduction <add>, %292, %cst_161 [2] : vector<2x8x8xf32> to vector<2x8xf32>
      %294 = vector.shape_cast %293 : vector<2x8xf32> to vector<2x8x1xf32>
      %295 = tpu.reciprocal %294 {approx = true} : vector<2x8x1xf32> -> vector<2x8x1xf32>
      %296 = vector.broadcast %295 : vector<2x8x1xf32> to vector<2x8x8xf32>
      %297 = arith.mulf %292, %296 : vector<2x8x8xf32>
      %298 = arith.truncf %297 : vector<2x8x8xf32> to vector<2x8x8xbf16>
      "tpu.trace_start"() <{level = 10 : i32, message = "bqk,bkd->bqd"}> : () -> ()
      %cst_162 = arith.constant dense<0.000000e+00> : vector<2x8x8xf32>
      %299 = tpu.matmul %298, %286, %cst_162 {dimension_numbers = #tpu.dot_dimension_numbers<[2], [1], [1], [2], [0, 0, 0, 1, 1, 2], [0], [0]>} : vector<2x8x8xbf16>, vector<2x8x8xbf16>, vector<2x8x8xf32> -> vector<2x8x8xf32>
      "tpu.trace_stop"() : () -> ()
      %300 = vector.shape_cast %299 : vector<2x8x8xf32> to vector<16x8xf32>
      %c0_163 = arith.constant 0 : index
      %c0_164 = arith.constant 0 : index
      %301 = vector.load %arg14[%c0_163, %c0_164] : memref<16x32xf32, #tpu.memory_space<vmem>>, vector<16x8xf32>
      tpu.vector_store %arg14[%c0_163, %c0_164], %300 {strides = array<i32>} : memref<16x32xf32, #tpu.memory_space<vmem>>, vector<16x8xf32>,
      %302 = vector.extract_strided_slice %277 {offsets = [0, 8], sizes = [16, 8], strides = [1, 1]} : vector<16x96xf32> to vector<16x8xf32>
      %303 = vector.shape_cast %302 : vector<16x8xf32> to vector<2x8x8xf32>
      %304 = arith.truncf %303 : vector<2x8x8xf32> to vector<2x8x8xbf16>
      %305 = vector.extract_strided_slice %277 {offsets = [0, 40], sizes = [16, 8], strides = [1, 1]} : vector<16x96xf32> to vector<16x8xf32>
      %306 = vector.shape_cast %305 : vector<16x8xf32> to vector<2x8x8xf32>
      %307 = arith.truncf %306 : vector<2x8x8xf32> to vector<2x8x8xbf16>
      %308 = vector.extract_strided_slice %277 {offsets = [0, 72], sizes = [16, 8], strides = [1, 1]} : vector<16x96xf32> to vector<16x8xf32>
      %309 = vector.shape_cast %308 : vector<16x8xf32> to vector<2x8x8xf32>
      %310 = arith.truncf %309 : vector<2x8x8xf32> to vector<2x8x8xbf16>
      "tpu.trace_start"() <{level = 10 : i32, message = "bqd,bkd->bqk"}> : () -> ()
      %cst_165 = arith.constant dense<0.000000e+00> : vector<2x8x8xf32>
      %311 = tpu.matmul %304, %307, %cst_165 {dimension_numbers = #tpu.dot_dimension_numbers<[2], [2], [1], [1], [0, 0, 0, 1, 1, 1], [0], [0]>} : vector<2x8x8xbf16>, vector<2x8x8xbf16>, vector<2x8x8xf32> -> vector<2x8x8xf32>
      "tpu.trace_stop"() : () -> ()
      %cst_166 = arith.constant dense<0xFF800000> : vector<2x8xf32>
      %312 = vector.multi_reduction <maximumf>, %311, %cst_166 [2] : vector<2x8x8xf32> to vector<2x8xf32>
      %313 = vector.shape_cast %312 : vector<2x8xf32> to vector<2x8x1xf32>
      %314 = vector.broadcast %313 : vector<2x8x1xf32> to vector<2x8x8xf32>
      %315 = arith.subf %311, %314 : vector<2x8x8xf32>
      %316 = math.exp %315 : vector<2x8x8xf32>
      %cst_167 = arith.constant dense<0.000000e+00> : vector<2x8xf32>
      %317 = vector.multi_reduction <add>, %316, %cst_167 [2] : vector<2x8x8xf32> to vector<2x8xf32>
      %318 = vector.shape_cast %317 : vector<2x8xf32> to vector<2x8x1xf32>
      %319 = tpu.reciprocal %318 {approx = true} : vector<2x8x1xf32> -> vector<2x8x1xf32>
      %320 = vector.broadcast %319 : vector<2x8x1xf32> to vector<2x8x8xf32>
      %321 = arith.mulf %316, %320 : vector<2x8x8xf32>
      %322 = arith.truncf %321 : vector<2x8x8xf32> to vector<2x8x8xbf16>
      "tpu.trace_start"() <{level = 10 : i32, message = "bqk,bkd->bqd"}> : () -> ()
      %cst_168 = arith.constant dense<0.000000e+00> : vector<2x8x8xf32>
      %323 = tpu.matmul %322, %310, %cst_168 {dimension_numbers = #tpu.dot_dimension_numbers<[2], [1], [1], [2], [0, 0, 0, 1, 1, 2], [0], [0]>} : vector<2x8x8xbf16>, vector<2x8x8xbf16>, vector<2x8x8xf32> -> vector<2x8x8xf32>
      "tpu.trace_stop"() : () -> ()
      %324 = vector.shape_cast %323 : vector<2x8x8xf32> to vector<16x8xf32>
      %c0_169 = arith.constant 0 : index
      %c8_170 = arith.constant 8 : index
      %325 = vector.load %arg14[%c0_169, %c8_170] : memref<16x32xf32, #tpu.memory_space<vmem>>, vector<16x8xf32>
      tpu.vector_store %arg14[%c0_169, %c8_170], %324 {strides = array<i32>} : memref<16x32xf32, #tpu.memory_space<vmem>>, vector<16x8xf32>,
      %326 = vector.extract_strided_slice %277 {offsets = [0, 16], sizes = [16, 8], strides = [1, 1]} : vector<16x96xf32> to vector<16x8xf32>
      %327 = vector.shape_cast %326 : vector<16x8xf32> to vector<2x8x8xf32>
      %328 = arith.truncf %327 : vector<2x8x8xf32> to vector<2x8x8xbf16>
      %329 = vector.extract_strided_slice %277 {offsets = [0, 48], sizes = [16, 8], strides = [1, 1]} : vector<16x96xf32> to vector<16x8xf32>
      %330 = vector.shape_cast %329 : vector<16x8xf32> to vector<2x8x8xf32>
      %331 = arith.truncf %330 : vector<2x8x8xf32> to vector<2x8x8xbf16>
      %332 = vector.extract_strided_slice %277 {offsets = [0, 80], sizes = [16, 8], strides = [1, 1]} : vector<16x96xf32> to vector<16x8xf32>
      %333 = vector.shape_cast %332 : vector<16x8xf32> to vector<2x8x8xf32>
      %334 = arith.truncf %333 : vector<2x8x8xf32> to vector<2x8x8xbf16>
      "tpu.trace_start"() <{level = 10 : i32, message = "bqd,bkd->bqk"}> : () -> ()
      %cst_171 = arith.constant dense<0.000000e+00> : vector<2x8x8xf32>
      %335 = tpu.matmul %328, %331, %cst_171 {dimension_numbers = #tpu.dot_dimension_numbers<[2], [2], [1], [1], [0, 0, 0, 1, 1, 1], [0], [0]>} : vector<2x8x8xbf16>, vector<2x8x8xbf16>, vector<2x8x8xf32> -> vector<2x8x8xf32>
      "tpu.trace_stop"() : () -> ()
      %cst_172 = arith.constant dense<0xFF800000> : vector<2x8xf32>
      %336 = vector.multi_reduction <maximumf>, %335, %cst_172 [2] : vector<2x8x8xf32> to vector<2x8xf32>
      %337 = vector.shape_cast %336 : vector<2x8xf32> to vector<2x8x1xf32>
      %338 = vector.broadcast %337 : vector<2x8x1xf32> to vector<2x8x8xf32>
      %339 = arith.subf %335, %338 : vector<2x8x8xf32>
      %340 = math.exp %339 : vector<2x8x8xf32>
      %cst_173 = arith.constant dense<0.000000e+00> : vector<2x8xf32>
      %341 = vector.multi_reduction <add>, %340, %cst_173 [2] : vector<2x8x8xf32> to vector<2x8xf32>
      %342 = vector.shape_cast %341 : vector<2x8xf32> to vector<2x8x1xf32>
      %343 = tpu.reciprocal %342 {approx = true} : vector<2x8x1xf32> -> vector<2x8x1xf32>
      %344 = vector.broadcast %343 : vector<2x8x1xf32> to vector<2x8x8xf32>
      %345 = arith.mulf %340, %344 : vector<2x8x8xf32>
      %346 = arith.truncf %345 : vector<2x8x8xf32> to vector<2x8x8xbf16>
      "tpu.trace_start"() <{level = 10 : i32, message = "bqk,bkd->bqd"}> : () -> ()
      %cst_174 = arith.constant dense<0.000000e+00> : vector<2x8x8xf32>
      %347 = tpu.matmul %346, %334, %cst_174 {dimension_numbers = #tpu.dot_dimension_numbers<[2], [1], [1], [2], [0, 0, 0, 1, 1, 2], [0], [0]>} : vector<2x8x8xbf16>, vector<2x8x8xbf16>, vector<2x8x8xf32> -> vector<2x8x8xf32>
      "tpu.trace_stop"() : () -> ()
      %348 = vector.shape_cast %347 : vector<2x8x8xf32> to vector<16x8xf32>
      %c0_175 = arith.constant 0 : index
      %c16 = arith.constant 16 : index
      %349 = vector.load %arg14[%c0_175, %c16] : memref<16x32xf32, #tpu.memory_space<vmem>>, vector<16x8xf32>
      tpu.vector_store %arg14[%c0_175, %c16], %348 {strides = array<i32>} : memref<16x32xf32, #tpu.memory_space<vmem>>, vector<16x8xf32>,
      %350 = vector.extract_strided_slice %277 {offsets = [0, 24], sizes = [16, 8], strides = [1, 1]} : vector<16x96xf32> to vector<16x8xf32>
      %351 = vector.shape_cast %350 : vector<16x8xf32> to vector<2x8x8xf32>
      %352 = arith.truncf %351 : vector<2x8x8xf32> to vector<2x8x8xbf16>
      %353 = vector.extract_strided_slice %277 {offsets = [0, 56], sizes = [16, 8], strides = [1, 1]} : vector<16x96xf32> to vector<16x8xf32>
      %354 = vector.shape_cast %353 : vector<16x8xf32> to vector<2x8x8xf32>
      %355 = arith.truncf %354 : vector<2x8x8xf32> to vector<2x8x8xbf16>
      %356 = vector.extract_strided_slice %277 {offsets = [0, 88], sizes = [16, 8], strides = [1, 1]} : vector<16x96xf32> to vector<16x8xf32>
      %357 = vector.shape_cast %356 : vector<16x8xf32> to vector<2x8x8xf32>
      %358 = arith.truncf %357 : vector<2x8x8xf32> to vector<2x8x8xbf16>
      "tpu.trace_start"() <{level = 10 : i32, message = "bqd,bkd->bqk"}> : () -> ()
      %cst_176 = arith.constant dense<0.000000e+00> : vector<2x8x8xf32>
      %359 = tpu.matmul %352, %355, %cst_176 {dimension_numbers = #tpu.dot_dimension_numbers<[2], [2], [1], [1], [0, 0, 0, 1, 1, 1], [0], [0]>} : vector<2x8x8xbf16>, vector<2x8x8xbf16>, vector<2x8x8xf32> -> vector<2x8x8xf32>
      "tpu.trace_stop"() : () -> ()
      %cst_177 = arith.constant dense<0xFF800000> : vector<2x8xf32>
      %360 = vector.multi_reduction <maximumf>, %359, %cst_177 [2] : vector<2x8x8xf32> to vector<2x8xf32>
      %361 = vector.shape_cast %360 : vector<2x8xf32> to vector<2x8x1xf32>
      %362 = vector.broadcast %361 : vector<2x8x1xf32> to vector<2x8x8xf32>
      %363 = arith.subf %359, %362 : vector<2x8x8xf32>
      %364 = math.exp %363 : vector<2x8x8xf32>
      %cst_178 = arith.constant dense<0.000000e+00> : vector<2x8xf32>
      %365 = vector.multi_reduction <add>, %364, %cst_178 [2] : vector<2x8x8xf32> to vector<2x8xf32>
      %366 = vector.shape_cast %365 : vector<2x8xf32> to vector<2x8x1xf32>
      %367 = tpu.reciprocal %366 {approx = true} : vector<2x8x1xf32> -> vector<2x8x1xf32>
      %368 = vector.broadcast %367 : vector<2x8x1xf32> to vector<2x8x8xf32>
      %369 = arith.mulf %364, %368 : vector<2x8x8xf32>
      %370 = arith.truncf %369 : vector<2x8x8xf32> to vector<2x8x8xbf16>
      "tpu.trace_start"() <{level = 10 : i32, message = "bqk,bkd->bqd"}> : () -> ()
      %cst_179 = arith.constant dense<0.000000e+00> : vector<2x8x8xf32>
      %371 = tpu.matmul %370, %358, %cst_179 {dimension_numbers = #tpu.dot_dimension_numbers<[2], [1], [1], [2], [0, 0, 0, 1, 1, 2], [0], [0]>} : vector<2x8x8xbf16>, vector<2x8x8xbf16>, vector<2x8x8xf32> -> vector<2x8x8xf32>
      "tpu.trace_stop"() : () -> ()
      %372 = vector.shape_cast %371 : vector<2x8x8xf32> to vector<16x8xf32>
      %c0_180 = arith.constant 0 : index
      %c24 = arith.constant 24 : index
      %373 = vector.load %arg14[%c0_180, %c24] : memref<16x32xf32, #tpu.memory_space<vmem>>, vector<16x8xf32>
      tpu.vector_store %arg14[%c0_180, %c24], %372 {strides = array<i32>} : memref<16x32xf32, #tpu.memory_space<vmem>>, vector<16x8xf32>,
      %c0_181 = arith.constant 0 : index
      %c0_182 = arith.constant 0 : index
      %374 = vector.load %arg14[%c0_181, %c0_182] : memref<16x32xf32, #tpu.memory_space<vmem>>, vector<16x32xf32>
      %375 = arith.truncf %374 : vector<16x32xf32> to vector<16x32xbf16>
      %376 = arith.index_cast %arg15 : i32 to index
      %c0_183 = arith.constant 0 : index
      %c0_184 = arith.constant 0 : index
      %377 = vector.load %arg6[%376, %c0_183, %c0_184] : memref<2x32x32xbf16, #tpu.memory_space<vmem>>, vector<1x32x32xbf16>
      %378 = vector.shape_cast %377 : vector<1x32x32xbf16> to vector<32x32xbf16>
      %cst_185 = arith.constant dense<0.000000e+00> : vector<16x32xf32>
      %379 = tpu.matmul %375, %378, %cst_185 {dimension_numbers = #tpu.dot_dimension_numbers<[1], [0], [0], [1], [0, 0, 1, 1], [], []>} : vector<16x32xbf16>, vector<32x32xbf16>, vector<16x32xf32> -> vector<16x32xf32>
      %380 = vector.broadcast %265 : vector<1x32xf32> to vector<16x32xf32>
      %381 = arith.addf %379, %380 : vector<16x32xf32>
      %382 = arith.addf %381, %arg16 : vector<16x32xf32>
      %cst_186 = arith.constant dense<0.000000e+00> : vector<16xf32>
      %383 = vector.multi_reduction <add>, %382, %cst_186 [1] : vector<16x32xf32> to vector<16xf32>
      %384 = vector.shape_cast %383 : vector<16xf32> to vector<16x1xf32>
      %cst_187 = arith.constant 3.200000e+01 : f32
      %385 = vector.broadcast %cst_187 : f32 to vector<16x1xf32>
      %386 = arith.divf %384, %385 : vector<16x1xf32>
      %387 = vector.broadcast %386 : vector<16x1xf32> to vector<16x32xf32>
      %388 = arith.subf %382, %387 : vector<16x32xf32>
      %389 = arith.mulf %388, %388 : vector<16x32xf32>
      %cst_188 = arith.constant dense<0.000000e+00> : vector<16xf32>
      %390 = vector.multi_reduction <add>, %389, %cst_188 [1] : vector<16x32xf32> to vector<16xf32>
      %391 = vector.shape_cast %390 : vector<16xf32> to vector<16x1xf32>
      %cst_189 = arith.constant 3.200000e+01 : f32
      %392 = vector.broadcast %cst_189 : f32 to vector<16x1xf32>
      %393 = arith.divf %391, %392 : vector<16x1xf32>
      %cst_190 = arith.constant 9.99999996E-13 : f32
      %394 = vector.broadcast %cst_190 : f32 to vector<16x1xf32>
      %395 = arith.addf %393, %394 : vector<16x1xf32>
      %396 = math.rsqrt %395 : vector<16x1xf32>
      %397 = vector.broadcast %396 : vector<16x1xf32> to vector<16x32xf32>
      %398 = arith.mulf %388, %397 : vector<16x32xf32>
      %399 = vector.broadcast %266 : vector<1x32xf32> to vector<16x32xf32>
      %400 = arith.mulf %398, %399 : vector<16x32xf32>
      %401 = vector.broadcast %267 : vector<1x32xf32> to vector<16x32xf32>
      %402 = arith.addf %400, %401 : vector<16x32xf32>
      %403 = arith.truncf %402 : vector<16x32xf32> to vector<16x32xbf16>
      %404 = arith.index_cast %arg15 : i32 to index
      %c0_191 = arith.constant 0 : index
      %c0_192 = arith.constant 0 : index
      %405 = vector.load %arg7[%404, %c0_191, %c0_192] : memref<2x32x128xbf16, #tpu.memory_space<vmem>>, vector<1x32x128xbf16>
      %406 = vector.shape_cast %405 : vector<1x32x128xbf16> to vector<32x128xbf16>
      %cst_193 = arith.constant dense<0.000000e+00> : vector<16x128xf32>
      %407 = tpu.matmul %403, %406, %cst_193 {dimension_numbers = #tpu.dot_dimension_numbers<[1], [0], [0], [1], [0, 0, 1, 1], [], []>} : vector<16x32xbf16>, vector<32x128xbf16>, vector<16x128xf32> -> vector<16x128xf32>
      %408 = vector.broadcast %264 : vector<1x128xf32> to vector<16x128xf32>
      %409 = arith.addf %407, %408 : vector<16x128xf32>
      %cst_194 = arith.constant 5.000000e-01 : f32
      %410 = vector.broadcast %cst_194 : f32 to vector<16x128xf32>
      %411 = arith.mulf %410, %409 : vector<16x128xf32>
      %cst_195 = arith.constant 4.471500e-02 : f32
      %412 = vector.broadcast %cst_195 : f32 to vector<16x128xf32>
      %413 = arith.mulf %412, %409 : vector<16x128xf32>
      %414 = arith.mulf %413, %409 : vector<16x128xf32>
      %415 = arith.mulf %414, %409 : vector<16x128xf32>
      %416 = arith.addf %409, %415 : vector<16x128xf32>
      %cst_196 = arith.constant 0.797884583 : f32
      %417 = vector.broadcast %cst_196 : f32 to vector<16x128xf32>
      %418 = arith.mulf %417, %416 : vector<16x128xf32>
      %419 = math.tanh %418 : vector<16x128xf32>
      %cst_197 = arith.constant 1.000000e+00 : f32
      %420 = vector.broadcast %cst_197 : f32 to vector<16x128xf32>
      %421 = arith.addf %420, %419 : vector<16x128xf32>
      %422 = arith.mulf %411, %421 : vector<16x128xf32>
      %423 = arith.truncf %422 : vector<16x128xf32> to vector<16x128xbf16>
      %424 = arith.index_cast %arg15 : i32 to index
      %c0_198 = arith.constant 0 : index
      %c0_199 = arith.constant 0 : index
      %425 = vector.load %arg8[%424, %c0_198, %c0_199] : memref<2x128x32xbf16, #tpu.memory_space<vmem>>, vector<1x128x32xbf16>
      %426 = vector.shape_cast %425 : vector<1x128x32xbf16> to vector<128x32xbf16>
      %cst_200 = arith.constant dense<0.000000e+00> : vector<16x32xf32>
      %427 = tpu.matmul %423, %426, %cst_200 {dimension_numbers = #tpu.dot_dimension_numbers<[1], [0], [0], [1], [0, 0, 1, 1], [], []>} : vector<16x128xbf16>, vector<128x32xbf16>, vector<16x32xf32> -> vector<16x32xf32>
      %428 = vector.broadcast %268 : vector<1x32xf32> to vector<16x32xf32>
      %429 = arith.addf %427, %428 : vector<16x32xf32>
      %430 = arith.addf %429, %402 : vector<16x32xf32>
      %cst_201 = arith.constant dense<0.000000e+00> : vector<16xf32>
      %431 = vector.multi_reduction <add>, %430, %cst_201 [1] : vector<16x32xf32> to vector<16xf32>
      %432 = vector.shape_cast %431 : vector<16xf32> to vector<16x1xf32>
      %cst_202 = arith.constant 3.200000e+01 : f32
      %433 = vector.broadcast %cst_202 : f32 to vector<16x1xf32>
      %434 = arith.divf %432, %433 : vector<16x1xf32>
      %435 = vector.broadcast %434 : vector<16x1xf32> to vector<16x32xf32>
      %436 = arith.subf %430, %435 : vector<16x32xf32>
      %437 = arith.mulf %436, %436 : vector<16x32xf32>
      %cst_203 = arith.constant dense<0.000000e+00> : vector<16xf32>
      %438 = vector.multi_reduction <add>, %437, %cst_203 [1] : vector<16x32xf32> to vector<16xf32>
      %439 = vector.shape_cast %438 : vector<16xf32> to vector<16x1xf32>
      %cst_204 = arith.constant 3.200000e+01 : f32
      %440 = vector.broadcast %cst_204 : f32 to vector<16x1xf32>
      %441 = arith.divf %439, %440 : vector<16x1xf32>
      %cst_205 = arith.constant 9.99999996E-13 : f32
      %442 = vector.broadcast %cst_205 : f32 to vector<16x1xf32>
      %443 = arith.addf %441, %442 : vector<16x1xf32>
      %444 = math.rsqrt %443 : vector<16x1xf32>
      %445 = vector.broadcast %444 : vector<16x1xf32> to vector<16x32xf32>
      %446 = arith.mulf %436, %445 : vector<16x32xf32>
      %447 = vector.broadcast %269 : vector<1x32xf32> to vector<16x32xf32>
      %448 = arith.mulf %446, %447 : vector<16x32xf32>
      %449 = vector.broadcast %270 : vector<1x32xf32> to vector<16x32xf32>
      %450 = arith.addf %448, %449 : vector<16x32xf32>
      scf.yield %450 : vector<16x32xf32>
    }
    %c2_i32_129 = arith.constant 2 : i32
    %201 = vector.shape_cast %200 : vector<16x32xf32> to vector<2x8x32xf32>
    %202 = vector.extract_strided_slice %201 {offsets = [0, 0, 0], sizes = [2, 1, 32], strides = [1, 1, 1]} : vector<2x8x32xf32> to vector<2x1x32xf32>
    %203 = vector.shape_cast %202 : vector<2x1x32xf32> to vector<2x32xf32>
    %204 = arith.truncf %203 : vector<2x32xf32> to vector<2x32xbf16>
    %c0_130 = arith.constant 0 : index
    %c0_131 = arith.constant 0 : index
    %205 = vector.load %arg10[%c0_130, %c0_131] : memref<32x32xbf16, #tpu.memory_space<vmem>>, vector<32x32xbf16>
    %cst_132 = arith.constant dense<0.000000e+00> : vector<2x32xf32>
    %206 = tpu.matmul %204, %205, %cst_132 {dimension_numbers = #tpu.dot_dimension_numbers<[1], [0], [0], [1], [0, 0, 1, 1], [], []>} : vector<2x32xbf16>, vector<32x32xbf16>, vector<2x32xf32> -> vector<2x32xf32>
    %c0_133 = arith.constant 0 : index
    %c0_134 = arith.constant 0 : index
    %207 = vector.load %arg12[%c0_133, %c0_134] : memref<2x32xf32, #tpu.memory_space<vmem>>, vector<1x32xf32>
    %208 = vector.broadcast %207 : vector<1x32xf32> to vector<2x32xf32>
    %209 = arith.addf %206, %208 : vector<2x32xf32>
    %210 = math.tanh %209 : vector<2x32xf32>
    %211 = arith.truncf %210 : vector<2x32xf32> to vector<2x32xbf16>
    %c0_135 = arith.constant 0 : index
    %c0_136 = arith.constant 0 : index
    %212 = vector.load %arg11[%c0_135, %c0_136] : memref<32x2xbf16, #tpu.memory_space<vmem>>, vector<32x2xbf16>
    %cst_137 = arith.constant dense<0.000000e+00> : vector<2x2xf32>
    %213 = tpu.matmul %211, %212, %cst_137 {dimension_numbers = #tpu.dot_dimension_numbers<[1], [0], [0], [1], [0, 0, 1, 1], [], []>} : vector<2x32xbf16>, vector<32x2xbf16>, vector<2x2xf32> -> vector<2x2xf32>
    %c1_138 = arith.constant 1 : index
    %c0_139 = arith.constant 0 : index
    %214 = vector.load %arg12[%c1_138, %c0_139] : memref<2x32xf32, #tpu.memory_space<vmem>>, vector<1x2xf32>
    %215 = vector.broadcast %214 : vector<1x2xf32> to vector<2x2xf32>
    %216 = arith.addf %213, %215 : vector<2x2xf32>
    %217 = tpu.iota {dimensions = array<i32: 1>} : vector<1x2xi32>
    %cst_140 = arith.constant 0.000000e+00 : f32
    %218 = vector.broadcast %cst_140 : f32 to vector<1x1xf32>
    %219 = vector.extract_strided_slice %216 {offsets = [0, 0], sizes = [1, 2], strides = [1, 1]} : vector<2x2xf32> to vector<1x2xf32>
    %cst_141 = arith.constant dense<0xFF800000> : vector<1xf32>
    %220 = vector.multi_reduction <maximumf>, %219, %cst_141 [1] : vector<1x2xf32> to vector<1xf32>
    %221 = vector.shape_cast %220 : vector<1xf32> to vector<1x1xf32>
    %222 = vector.broadcast %221 : vector<1x1xf32> to vector<1x2xf32>
    %223 = arith.subf %219, %222 : vector<1x2xf32>
    %224 = math.exp %223 : vector<1x2xf32>
    %cst_142 = arith.constant dense<0.000000e+00> : vector<1xf32>
    %225 = vector.multi_reduction <add>, %224, %cst_142 [1] : vector<1x2xf32> to vector<1xf32>
    %226 = vector.shape_cast %225 : vector<1xf32> to vector<1x1xf32>
    %227 = math.log %226 : vector<1x1xf32>
    %228 = arith.addf %227, %221 : vector<1x1xf32>
    %c0_143 = arith.constant 0 : index
    %229 = memref.load %arg2[%c0_143] : memref<2xi32, #tpu.memory_space<smem>>
    %230 = vector.broadcast %229 : i32 to vector<1x2xi32>
    %231 = arith.cmpi eq, %217, %230 : vector<1x2xi32>
    %cst_144 = arith.constant 0.000000e+00 : f32
    %232 = vector.broadcast %cst_144 : f32 to vector<1x2xf32>
    %233 = arith.select %231, %219, %232 : vector<1x2xi1>, vector<1x2xf32>
    %cst_145 = arith.constant dense<0.000000e+00> : vector<1xf32>
    %234 = vector.multi_reduction <add>, %233, %cst_145 [1] : vector<1x2xf32> to vector<1xf32>
    %235 = vector.shape_cast %234 : vector<1xf32> to vector<1x1xf32>
    %236 = arith.subf %228, %235 : vector<1x1xf32>
    %237 = arith.addf %218, %236 : vector<1x1xf32>
    %238 = vector.extract_strided_slice %216 {offsets = [1, 0], sizes = [1, 2], strides = [1, 1]} : vector<2x2xf32> to vector<1x2xf32>
    %cst_146 = arith.constant dense<0xFF800000> : vector<1xf32>
    %239 = vector.multi_reduction <maximumf>, %238, %cst_146 [1] : vector<1x2xf32> to vector<1xf32>
    %240 = vector.shape_cast %239 : vector<1xf32> to vector<1x1xf32>
    %241 = vector.broadcast %240 : vector<1x1xf32> to vector<1x2xf32>
    %242 = arith.subf %238, %241 : vector<1x2xf32>
    %243 = math.exp %242 : vector<1x2xf32>
    %cst_147 = arith.constant dense<0.000000e+00> : vector<1xf32>
    %244 = vector.multi_reduction <add>, %243, %cst_147 [1] : vector<1x2xf32> to vector<1xf32>
    %245 = vector.shape_cast %244 : vector<1xf32> to vector<1x1xf32>
    %246 = math.log %245 : vector<1x1xf32>
    %247 = arith.addf %246, %240 : vector<1x1xf32>
    %c1_148 = arith.constant 1 : index
    %248 = memref.load %arg2[%c1_148] : memref<2xi32, #tpu.memory_space<smem>>
    %249 = vector.broadcast %248 : i32 to vector<1x2xi32>
    %250 = arith.cmpi eq, %217, %249 : vector<1x2xi32>
    %cst_149 = arith.constant 0.000000e+00 : f32
    %251 = vector.broadcast %cst_149 : f32 to vector<1x2xf32>
    %252 = arith.select %250, %238, %251 : vector<1x2xi1>, vector<1x2xf32>
    %cst_150 = arith.constant dense<0.000000e+00> : vector<1xf32>
    %253 = vector.multi_reduction <add>, %252, %cst_150 [1] : vector<1x2xf32> to vector<1xf32>
    %254 = vector.shape_cast %253 : vector<1xf32> to vector<1x1xf32>
    %255 = arith.subf %247, %254 : vector<1x1xf32>
    %256 = arith.addf %237, %255 : vector<1x1xf32>
    %cst_151 = arith.constant 5.000000e-01 : f32
    %257 = vector.broadcast %cst_151 : f32 to vector<1x1xf32>
    %258 = arith.mulf %256, %257 : vector<1x1xf32>
    %c0_152 = arith.constant 0 : index
    %c0_153 = arith.constant 0 : index
    %259 = vector.load %arg13[%c0_152, %c0_153] : memref<1x1xf32, #tpu.memory_space<vmem>>, vector<1x1xf32>
    tpu.vector_store %arg13[%c0_152, %c0_153], %258 {strides = array<i32>} : memref<1x1xf32, #tpu.memory_space<vmem>>, vector<1x1xf32>,
    return
  }
}

</mosaic_0001>

<bundles_post_ra>
// kernel: _model_forward.1
= control target key start
LH: loop header
LB: loop body
LE: loop exit
PB: predicated region body
PF: predicated region fallthrough
CT: control target
= control target key end

     0   :  { %18 = vsyncpa [#allocation5], 0  ;;  %s2305_s0 = inlined_call_operand.vmem [shape: s32[16], index: 0, kind: input, shape index: {}]   ;;  %s2306_s1 = inlined_call_operand.vmem [shape: s32[16], index: 1, kind: input, shape index: {}]   ;;  %s2307_s2 = inlined_call_operand.vmem [shape: s32[2], index: 2, kind: input, shape index: {}]   ;;  %s2308_s3 = inlined_call_operand.vmem [shape: f32[134,32], index: 3, kind: input, shape index: {}]   ;;  %s2309_s4 = inlined_call_operand.vmem [shape: f32[2,32], index: 4, kind: input, shape index: {}]   ;;  %s2310_s5 = inlined_call_operand.vmem [shape: bf16[2,32,96], index: 5, kind: input, shape index: {}]   ;;  %s2311_s6 = inlined_call_operand.vmem [shape: bf16[2,32,32], index: 6, kind: input, shape index: {}]   ;;  %s2312_s7 = inlined_call_operand.vmem [shape: bf16[2,32,128], index: 7, kind: input, shape index: {}]   ;;  %s2313_s8 = inlined_call_operand.vmem [shape: bf16[2,128,32], index: 8, kind: input, shape index: {}]   ;;  %s2314_s9 = inlined_call_operand.vmem [shape: f32[2,8,128], index: 9, kind: input, shape index: {}]   ;;  %s2315_s10 = inlined_call_operand.vmem [shape: bf16[32,32], index: 10, kind: input, shape index: {}]   ;;  %s2316_s11 = inlined_call_operand.vmem [shape: bf16[32,2], index: 11, kind: input, shape index: {}]   ;;  %s2317_s12 = inlined_call_operand.vmem [shape: f32[2,32], index: 12, kind: input, shape index: {}]   ;;  %s2318_s13 = inlined_call_operand.hbm [shape: f32[1,1], index: 13, kind: output, shape index: {}]  }
   0x1   :  { %19 = vsyncpa [#allocation7], 0  ;;  %s35_s27 = sshll.u32 %s2306_s1, 4  ;;  %s36_s27 = int_to_ptr.vmem [resolvable:$true] %s35_s27 }
   0x2   :  { %20 = vsyncpa [#allocation4], 0  ;;  %s26_s30 = sshll.u32 %s2305_s0, 4  ;;  %s1725_s14 = smov [#allocation6]   ;;  %s27_s30 = int_to_ptr.vmem [resolvable:$true] %s26_s30 }
   0x3   :  { %38 = dma.vmem_to_smem %s36_s27, 16, %s1725_s14, [#allocation7]  }
   0x4   :  { %s1726_s15 = smov [#allocation3]   ;;  %s44_s18 = sshll.u32 %s2307_s2, 4  ;;  %s45_s18 = int_to_ptr.vmem [resolvable:$true] %s44_s18 }
   0x5   :  { %29 = dma.vmem_to_smem %s27_s30, 16, %s1726_s15, [#allocation5]  }
   0x6   :  { %s1727_s19 = smov [#allocation8]  }
   0x7   :  { %47 = dma.vmem_to_smem %s45_s18, 16, %s1727_s19, [#allocation7]  }
   0x8   :  { %1707 = dma.done.wait [#allocation5], 16  }
   0x9   :  { %1708 = vsyncadd [#allocation5], 4294967280 }
   0xa   :  { %1709 = dma.done.wait [#allocation7], 32  }
   0xb   :  { %1710 = vsyncadd [#allocation7], 4294967264 }
   0xc   :  { %80 = sfence }
   0xd   :  { %s82_s1 = sld [smem:[#allocation3]]  ;;  %v86_v0 = vld [vmem:[%s2308_s3 + $0x64] sm:$0x1]  ;;  %v98_v2 = vld [vmem:[%s2308_s3 + $0x65] sm:$0x1]  ;;  %vm92_vm0 = vcmask 253952  }
   0xe   :  { %s83_s20 = sld [smem:[#allocation6]]  ;;  %v109_v6 = vld [vmem:[%s2308_s3 + $0x66] sm:$0x1]  ;;  %v120_v10 = vld [vmem:[%s2308_s3 + $0x67] sm:$0x1]  ;;  %vm263_vm1 = vcmask 261120  }
   0xf   :  { %s1360_s0 = sld [smem:[#allocation3 + $0x1]]  ;;  %v131_v12 = vld [vmem:[%s2308_s3 + $0x68] sm:$0x1]  ;;  %v142_v21 = vld [vmem:[%s2308_s3 + $0x69] sm:$0x1] }
  0x10   :  { %s1361_s21 = sld [smem:[#allocation6 + $0x1]]  ;;  %v153_v26 = vld [vmem:[%s2308_s3 + $0x6a] sm:$0x1]  ;;  %v164_v31 = vld [vmem:[%s2308_s3 + $0x6b] sm:$0x1] }
  0x11   :  { %s1363_s22 = sld [smem:[#allocation3 + $0x2]]  ;;  %v175_v36 = vld [vmem:[%s2308_s3 + $0x64] sm:$0x1]  ;;  %v186_v41 = vld [vmem:[%s2308_s3 + $0x65] sm:$0x1] }
  0x12   :  { %s1826_s25 = sld [smem:[#allocation6 + $0x2]]  ;;  %v197_v46 = vld [vmem:[%s2308_s3 + $0x66] sm:$0x1]  ;;  %v208_v51 = vld [vmem:[%s2308_s3 + $0x67] sm:$0x1] }
  0x13   :  { %s84_s27 = scalar_lea.vmem %s2308_s3, %s82_s1  ;;  %s1831_s28 = sld [smem:[#allocation3 + $0x3]]  ;;  %v219_v56 = vld [vmem:[%s2308_s3 + $0x68] sm:$0x1]  ;;  %v230_v61 = vld [vmem:[%s2308_s3 + $0x69] sm:$0x1] }
  0x14   :  { %v85_v1 = vld [vmem:[%s84_s27] sm:$0x1]  ;;  %s1291_s14 = scalar_lea.vmem %s2308_s3, %s83_s20  ;;  %s1839_s17 = sld [smem:[#allocation6 + $0x3]] }
  0x15   :  { %v87_v3 = vadd.f32 %v86_v0, %v85_v1  ;;  %v1359_v4 = vld [vmem:[%s1291_s14 + $0x84] sm:$0x1]  ;;  %s96_s1 = scalar_lea.vmem %s2308_s3, %s1360_s0  ;;  %s1844_s23 = sld [smem:[#allocation3 + $0x4]] }
  0x16   :  { %v97_v5 = vld [vmem:[%s96_s1] sm:$0x1]  ;;  %s1294_s20 = scalar_lea.vmem %s2308_s3, %s1361_s21  ;;  %s1852_s29 = sld [smem:[#allocation6 + $0x4]] }
  0x17   :  { %v91_v7 = vadd.f32 %v1359_v4, %v87_v3  ;;  %v99_v8 = vadd.f32 %v98_v2, %v97_v5  ;;  %v1362_v9 = vld [vmem:[%s1294_s20 + $0x84] sm:$0x1]  ;;  %s107_s14 = scalar_lea.vmem %s2308_s3, %s1363_s22  ;;  %s1860_s21 = sld [smem:[#allocation3 + $0x5]]  ;;  %v241_v3 = vld [vmem:[%s2308_s3 + $0x6a] sm:$0x1] }
  0x18   :  { %v108_v11 = vld [vmem:[%s107_s14] sm:$0x1]  ;;  %s1297_s1 = scalar_lea.vmem %s2308_s3, %s1826_s25  ;;  %s1869_s20 = sld [smem:[#allocation6 + $0x5]] }
  0x19   :  { %93 = vst.msk [vmem:[#allocation2] sm:$0x1] %vm92_vm0, %v91_v7  ;;  %v103_v13 = vadd.f32 %v1362_v9, %v99_v8  ;;  %v110_v14 = vadd.f32 %v109_v6, %v108_v11  ;;  %v1365_v15 = vld [vmem:[%s1297_s1 + $0x84] sm:$0x1]  ;;  %s118_s27 = scalar_lea.vmem %s2308_s3, %s1831_s28  ;;  %s1876_s30 = sld [smem:[#allocation3 + $0x6]] }
  0x1a   :  { %v119_v16 = vld [vmem:[%s118_s27] sm:$0x1]  ;;  %s1300_s14 = scalar_lea.vmem %s2308_s3, %s1839_s17  ;;  %s1882_s15 = sld [smem:[#allocation6 + $0x6]]  ;;  %v252_v9 = vld [vmem:[%s2308_s3 + $0x6b] sm:$0x1] }
  0x1b   :  { %104 = vst.msk [vmem:[#allocation2 + $0x1] sm:$0x1] %vm92_vm0, %v103_v13  ;;  %v114_v17 = vadd.f32 %v1365_v15, %v110_v14  ;;  %v121_v18 = vadd.f32 %v120_v10, %v119_v16  ;;  %v1368_v19 = vld [vmem:[%s1300_s14 + $0x84] sm:$0x1]  ;;  %s129_s28 = scalar_lea.vmem %s2308_s3, %s1844_s23  ;;  %s1889_s19 = sld [smem:[#allocation3 + $0x7]] }
  0x1c   :  { %v130_v20 = vld [vmem:[%s129_s28] sm:$0x1]  ;;  %s1303_s17 = scalar_lea.vmem %s2308_s3, %s1852_s29  ;;  %s1898_s26 = sld [smem:[#allocation6 + $0x7]] }
  0x1d   :  { %115 = vst.msk [vmem:[#allocation2 + $0x2] sm:$0x1] %vm92_vm0, %v114_v17  ;;  %v125_v22 = vadd.f32 %v1368_v19, %v121_v18  ;;  %v132_v23 = vadd.f32 %v131_v12, %v130_v20  ;;  %v1371_v24 = vld [vmem:[%s1303_s17 + $0x84] sm:$0x1]  ;;  %s140_s25 = scalar_lea.vmem %s2308_s3, %s1860_s21  ;;  %s1905_s0 = sld [smem:[#allocation3 + $0x8]]  ;;  %v1728_v20 = vmov 32.0  }
  0x1e   :  { %v141_v25 = vld [vmem:[%s140_s25] sm:$0x1]  ;;  %s1306_s16 = scalar_lea.vmem %s2308_s3, %s1869_s20  ;;  %s1914_s1 = sld [smem:[#allocation6 + $0x8]]  ;;  %1573 = vrcp.f32 %v1728_v20 }
  0x1f   :  { %126 = vst.msk [vmem:[#allocation2 + $0x3] sm:$0x1] %vm92_vm0, %v125_v22  ;;  %v136_v27 = vadd.f32 %v1371_v24, %v132_v23  ;;  %v143_v28 = vadd.f32 %v142_v21, %v141_v25  ;;  %v1374_v29 = vld [vmem:[%s1306_s16 + $0x84] sm:$0x1]  ;;  %s151_s17 = scalar_lea.vmem %s2308_s3, %s1876_s30  ;;  %s1921_s2 = sld [smem:[#allocation3 + $0x9]] }
  0x20   :  { %v152_v30 = vld [vmem:[%s151_s17] sm:$0x1]  ;;  %s1309_s23 = scalar_lea.vmem %s2308_s3, %s1882_s15  ;;  %s1930_s29 = sld [smem:[#allocation6 + $0x9]] }
  0x21   :  { %137 = vst.msk [vmem:[#allocation2 + $0x4] sm:$0x1] %vm92_vm0, %v136_v27  ;;  %v147_v32 = vadd.f32 %v1374_v29, %v143_v28  ;;  %v154_v33 = vadd.f32 %v153_v26, %v152_v30  ;;  %v1377_v34 = vld [vmem:[%s1309_s23 + $0x84] sm:$0x1]  ;;  %s162_s16 = scalar_lea.vmem %s2308_s3, %s1889_s19  ;;  %s1937_s18 = sld [smem:[#allocation3 + $0xa]] }
  0x22   :  { %v163_v35 = vld [vmem:[%s162_s16] sm:$0x1]  ;;  %s1312_s21 = scalar_lea.vmem %s2308_s3, %s1898_s26  ;;  %s1946_s20 = sld [smem:[#allocation6 + $0xa]] }
  0x23   :  { %148 = vst.msk [vmem:[#allocation2 + $0x5] sm:$0x1] %vm92_vm0, %v147_v32  ;;  %v158_v37 = vadd.f32 %v1377_v34, %v154_v33  ;;  %v165_v38 = vadd.f32 %v164_v31, %v163_v35  ;;  %v1380_v39 = vld [vmem:[%s1312_s21 + $0x84] sm:$0x1]  ;;  %s173_s23 = scalar_lea.vmem %s2308_s3, %s1905_s0  ;;  %s1953_s27 = sld [smem:[#allocation3 + $0xb]] }
  0x24   :  { %v174_v40 = vld [vmem:[%s173_s23] sm:$0x1]  ;;  %s1315_s30 = scalar_lea.vmem %s2308_s3, %s1914_s1  ;;  %s1962_s15 = sld [smem:[#allocation6 + $0xb]]  ;;  %v1574_v21 = vpop.eup %1573 }
  0x25   :  { %159 = vst.msk [vmem:[#allocation2 + $0x6] sm:$0x1] %vm92_vm0, %v158_v37  ;;  %v169_v42 = vadd.f32 %v1380_v39, %v165_v38  ;;  %v176_v43 = vadd.f32 %v175_v36, %v174_v40  ;;  %v1383_v44 = vld [vmem:[%s1315_s30 + $0x84] sm:$0x1]  ;;  %s184_s21 = scalar_lea.vmem %s2308_s3, %s1921_s2  ;;  %s1969_s24 = sld [smem:[#allocation3 + $0xc]]  ;;  %v271_v22 = vmul.f32 32.0, %v1574_v21  ;;  %vm275_vm2 = vweird.f32 %v1574_v21 }
  0x26   :  { %v185_v45 = vld [vmem:[%s184_s21] sm:$0x1]  ;;  %s1318_s19 = scalar_lea.vmem %s2308_s3, %s1930_s29  ;;  %s1978_s26 = sld [smem:[#allocation6 + $0xc]] }
  0x27   :  { %170 = vst.msk [vmem:[#allocation2 + $0x7] sm:$0x1] %vm92_vm0, %v169_v42  ;;  %v180_v47 = vadd.f32 %v1383_v44, %v176_v43  ;;  %v187_v48 = vadd.f32 %v186_v41, %v185_v45  ;;  %v1386_v49 = vld [vmem:[%s1318_s19 + $0x84] sm:$0x1]  ;;  %s195_s30 = scalar_lea.vmem %s2308_s3, %s1937_s18  ;;  %s1985_s14 = sld [smem:[#allocation3 + $0xd]]  ;;  %v272_v23 = vsub.f32 1.0, %v271_v22 }
  0x28   :  { %v196_v50 = vld [vmem:[%s195_s30] sm:$0x1]  ;;  %s1321_s0 = scalar_lea.vmem %s2308_s3, %s1946_s20  ;;  %s1994_s1 = sld [smem:[#allocation6 + $0xd]] }
  0x29   :  { %181 = vst.msk [vmem:[#allocation2 + $0x8] sm:$0x1] %vm92_vm0, %v180_v47  ;;  %v191_v52 = vadd.f32 %v1386_v49, %v187_v48  ;;  %v198_v53 = vadd.f32 %v197_v46, %v196_v50  ;;  %v1389_v54 = vld [vmem:[%s1321_s0 + $0x84] sm:$0x1]  ;;  %s206_s19 = scalar_lea.vmem %s2308_s3, %s1953_s27  ;;  %s2001_s22 = sld [smem:[#allocation3 + $0xe]]  ;;  %v273_v24 = vmul.f32 %v1574_v21, %v272_v23 }
  0x2a   :  { %v207_v55 = vld [vmem:[%s206_s19] sm:$0x1]  ;;  %s1324_s2 = scalar_lea.vmem %s2308_s3, %s1962_s15  ;;  %s2010_s29 = sld [smem:[#allocation6 + $0xe]] }
  0x2b   :  { %192 = vst.msk [vmem:[#allocation2 + $0x9] sm:$0x1] %vm92_vm0, %v191_v52  ;;  %v202_v57 = vadd.f32 %v1389_v54, %v198_v53  ;;  %v209_v58 = vadd.f32 %v208_v51, %v207_v55  ;;  %v1392_v59 = vld [vmem:[%s1324_s2 + $0x84] sm:$0x1]  ;;  %s217_s0 = scalar_lea.vmem %s2308_s3, %s1969_s24  ;;  %s2017_s28 = sld [smem:[#allocation3 + $0xf]]  ;;  %v274_v25 = vadd.f32 %v1574_v21, %v273_v24 }
  0x2c   :  { %v218_v60 = vld [vmem:[%s217_s0] sm:$0x1]  ;;  %s1327_s18 = scalar_lea.vmem %s2308_s3, %s1978_s26  ;;  %s2026_s20 = sld [smem:[#allocation6 + $0xf]]  ;;  %v1572_v51 = vld [vmem:[%s2309_s4 + $0x1] ss:$0 sm:$0xff] }
  0x2d   :  { %203 = vst.msk [vmem:[#allocation2 + $0xa] sm:$0x1] %vm92_vm0, %v202_v57  ;;  %v213_v62 = vadd.f32 %v1392_v59, %v209_v58  ;;  %v220_v63 = vadd.f32 %v219_v56, %v218_v60  ;;  %v1395_v0 = vld [vmem:[%s1327_s18 + $0x84] sm:$0x1]  ;;  %s228_s2 = scalar_lea.vmem %s2308_s3, %s1985_s14  ;;  %v2066_v26 = vsel %vm275_vm2, %v1574_v21, %v274_v25  ;;  %v1571_v49 = vld [vmem:[%s2309_s4] ss:$0 sm:$0xff] }
  0x2e   :  { %v259_v1 = vld [vmem:[#allocation2] sm:$0xff]  ;;  %s1330_s30 = scalar_lea.vmem %s2308_s3, %s1994_s1  ;;  %s2084_s4 = smov 0  }
  0x2f   :  { %v229_v2 = vld [vmem:[%s228_s2] sm:$0x1]  ;;  %v264_v4 = vsel %vm263_vm1, %v259_v1, 0.0  ;;  %214 = vst.msk [vmem:[#allocation2 + $0xb] sm:$0x1] %vm92_vm0, %v213_v62  ;;  %v224_v5 = vadd.f32 %v1395_v0, %v220_v63  ;;  %s239_s15 = scalar_lea.vmem %s2308_s3, %s2001_s22 }
  0x30   :  { %v231_v6 = vadd.f32 %v230_v61, %v229_v2  ;;  %v1398_v7 = vld [vmem:[%s1330_s30 + $0x84] sm:$0x1]  ;;  %265 = vadd.xlane.f32.xlu0 %v264_v4  ;;  %v240_v8 = vld [vmem:[%s239_s15] sm:$0x1]  ;;  %s1333_s18 = scalar_lea.vmem %s2308_s3, %s2010_s29 }
  0x31   :  { %225 = vst.msk [vmem:[#allocation2 + $0xc] sm:$0x1] %vm92_vm0, %v224_v5  ;;  %v242_v11 = vadd.f32 %v241_v3, %v240_v8  ;;  %v1401_v12 = vld [vmem:[%s1333_s18 + $0x84] sm:$0x1]  ;;  %s250_s2 = scalar_lea.vmem %s2308_s3, %s2017_s28 }
  0x32   :  { %v235_v10 = vadd.f32 %v1398_v7, %v231_v6  ;;  %v251_v13 = vld [vmem:[%s250_s2] sm:$0x1]  ;;  %s1336_s25 = scalar_lea.vmem %s2308_s3, %s2026_s20 }
  0x33   :  { %v246_v14 = vadd.f32 %v1401_v12, %v242_v11  ;;  %v253_v15 = vadd.f32 %v252_v9, %v251_v13  ;;  %v1404_v16 = vld [vmem:[%s1336_s25 + $0x84] sm:$0x1] }
  0x34   :  { %236 = vst.msk [vmem:[#allocation2 + $0xd] sm:$0x1] %vm92_vm0, %v235_v10 }
  0x35   :  { %247 = vst.msk [vmem:[#allocation2 + $0xe] sm:$0x1] %vm92_vm0, %v246_v14  ;;  %v257_v17 = vadd.f32 %v1404_v16, %v253_v15 }
  0x37   :  { %258 = vst.msk [vmem:[#allocation2 + $0xf] sm:$0x1] %vm92_vm0, %v257_v17 }
  0x3e   :  { %v260_v18 = vld [vmem:[#allocation2 + $0x8] sm:$0xff] }
  0x3f   :  { %v267_v19 = vsel %vm263_vm1, %v260_v18, 0.0 }
  0x40   :  { %268 = vadd.xlane.f32.xlu0 %v267_v19 }
  0xa3   :  { %v266_v27 = vpop.xlane.xlu0 %265 }
  0xa4   :  { %v277_v28 = vmul.f32 %v2066_v26, %v266_v27 }
  0xa6   :  { %v279_v29 = vsub.f32 %v259_v1, %v277_v28 }
  0xa8   :  { %v281_v30 = vmul.f32 %v279_v29, %v279_v29 }
  0xaa   :  { %v283_v31 = vsel %vm263_vm1, %v281_v30, 0.0 }
  0xab   :  { %284 = vadd.xlane.f32.xlu1 %v283_v31 }
  0xb3   :  { %v269_v32 = vpop.xlane.xlu0 %268 }
  0xb4   :  { %v278_v33 = vmul.f32 %v2066_v26, %v269_v32 }
  0xb6   :  { %v280_v34 = vsub.f32 %v260_v18, %v278_v33 }
  0xb8   :  { %v282_v35 = vmul.f32 %v280_v34, %v280_v34 }
  0xba   :  { %v286_v36 = vsel %vm263_vm1, %v282_v35, 0.0 }
  0xbb   :  { %287 = vadd.xlane.f32.xlu1 %v286_v36 }
 0x11e   :  { %v285_v37 = vpop.xlane.xlu1 %284 }
 0x11f   :  { %v289_v38 = vmul.f32 %v285_v37, %v2066_v26 }
 0x121   :  { %v291_v39 = vadd.f32 1e-12, %v289_v38 }
 0x123   :  { %1575 = vrsqrt.f32 %v291_v39  ;;  %vm299_vm4 = vweird.f32 %v291_v39 }
 0x129   :  { %v1576_v40 = vpop.eup %1575 }
 0x12a   :  { %v294_v41 = vmul.f32 %v1576_v40, %v291_v39  ;;  %vm300_vm3 = vweird.f32 %v1576_v40 }
 0x12b   :  { %vm301_vm5 = vmor %vm299_vm4, %vm300_vm3 }
 0x12c   :  { %v295_v42 = vmul.f32 %v1576_v40, %v294_v41 }
 0x12e   :  { %v296_v43 = vmul.f32 0.5, %v295_v42  ;;  %v288_v44 = vpop.xlane.xlu1 %287 }
 0x12f   :  { %v290_v45 = vmul.f32 %v288_v44, %v2066_v26 }
 0x130   :  { %v297_v46 = vsub.f32 1.5, %v296_v43 }
 0x131   :  { %v292_v47 = vadd.f32 1e-12, %v290_v45 }
 0x132   :  { %v298_v48 = vmul.f32 %v1576_v40, %v297_v46 }
 0x133   :  { %1577 = vrsqrt.f32 %v292_v47  ;;  %vm309_vm7 = vweird.f32 %v292_v47 }
 0x134   :  { %v302_v50 = vsel %vm301_vm5, %v1576_v40, %v298_v48 }
 0x135   :  { %v313_v52 = vmul.f32 %v302_v50, %v279_v29 }
 0x137   :  { %v316_v53 = vmul.f32 %v1571_v49, %v313_v52 }
 0x139   :  { %v1578_v54 = vpop.eup %1577  ;;  %v319_v55 = vadd.f32 %v1572_v51, %v316_v53  }
 0x13a   :  { %v304_v56 = vmul.f32 %v1578_v54, %v292_v47  ;;  %vm310_vm6 = vweird.f32 %v1578_v54 }
 0x13b   :  { %vm311_vm8 = vmor %vm309_vm7, %vm310_vm6 }
 0x13c   :  { %v305_v57 = vmul.f32 %v1578_v54, %v304_v56 }
 0x13e   :  { %v306_v58 = vmul.f32 0.5, %v305_v57 }
 0x140   :  { %v307_v59 = vsub.f32 1.5, %v306_v58 }
 0x142   :  { %v308_v60 = vmul.f32 %v1578_v54, %v307_v59 }
 0x144   :  { %v312_v61 = vsel %vm311_vm8, %v1578_v54, %v308_v60 }
 0x145   :  { %v314_v62 = vmul.f32 %v312_v61, %v280_v34 }
 0x147   :  { %v317_v63 = vmul.f32 %v1571_v49, %v314_v62 }
 0x149   :  { %v320_v0 = vadd.f32 %v1572_v51, %v317_v63  }
 0x14a LB: > { %s2096_s30 = sshll.u32 %s1723_s4, 4  ;;  %v332_v3 = vpack.c.bf16 %v1715_v0, %v1719_v55  ;;  %s1405_s0 = sshll.u32 %s1723_s4, 3  ;;  %vm377_vm9 = vcmask 64512   ;;  %vm450_vm10 = vcmask 1043456   ;;  %vm610_vm11 = vcmask 130112   ;;  %s1723_s4 = sphi %s2084_s4, %s326_s4   ;;  %v1719_v55 = vphi %v319_v55, %v2320_v55   ;;  %v1715_v0 = vphi %v320_v0, %v2319_v0  }
 0x14b   : > { %s335_s14 = scalar_lea.vmem %s2310_s5, %s2096_s30  ;;  %s330_s21 = scalar_lea.vmem %s2314_s9, %s1405_s0  ;;  %vm733_vm12 = vcmask 195712   ;;  %vm856_vm13 = vcmask 261312  }
 0x14c   : > { %v1508_v1 = vld [vmem:[%s335_s14 + $0x8] sm:$0xff]  ;;  %v1507_v2 = vld [vmem:[%s335_s14] sm:$0xff]  ;;  %s1729_s18 = smov 88   ;;  %s1730_s17 = smov 96  }
 0x14d   : > { %362 = vmatpush.bf16.msra.mxu0 %v1508_v1  ;;  %v2109_v4 = vld [vmem:[%s330_s21] sm:$0xff]  ;;  %s1731_s19 = smov 120   ;;  %s1732_s24 = smov 80  }
 0x14e   : > { %v340_v5 = vperm.slane %v2109_v4, 0  ;;  %s1733_s23 = smov 112   ;;  %s1734_s2 = smov 72  }
 0x14f   : > { %s1735_s22 = smov 104   ;;  %s1736_s26 = smov 64  }
 0x150   : > { %s1737_s25 = smov 56   ;;  %s1738_s3 = smov 48  }
 0x151   : > { %363 = vmatpush.bf16.msra.mxu0 %v1507_v2  ;;  %s1739_s29 = smov 40   ;;  %s1740_s28 = smov 16  }
 0x152   : > { %s1741_s20 = smov 8   ;;  %s1742_s27 = smov 24  }
 0x153   : > { %s863_s0 = scalar_lea.vmem %s2311_s6, %s2096_s30  ;;  %s952_s21 = scalar_lea.vmem %s2312_s7, %s2096_s30 }
 0x154   : > { %1416 = vmatmul.msk.bf16.vlgmr.msra.gmra.mxu0 %vm263_vm1, %v332_v3  ;;  %s1515_s30 = sshll.u32 %s1723_s4, 6  ;;  %s326_s4 = sadd.s32 1, %s1723_s4  }
 0x155   : > { %p323_p0 = scmp.ge.s32.totalorder %s326_s4, 2  }
 0x156   :  { %s1505_s4 = sld [smem:[#allocation8 + $0x1]] (%p323_p0) }
 0x1d1   : > { %v365_v6 = vpop.f32.mrf.mxu0 }
 0x1d2   : > { %v366_v7 = vadd.f32 %v365_v6, %v340_v5 }
 0x1d4   : > { %v370_v8 = vpack.c.bf16 %v366_v7, %v366_v7 }
 0x1d6   : > { %v373_v9 = vunpack.c.l.b16 %v370_v8 }
 0x1d8   : > { %v2112_v10 = vpack.c.b16 %v373_v9, %v373_v9 }
 0x1d9   : > { %v367_v11 = vpop.f32.mrf.mxu0 }
 0x1da   : > { %v368_v12 = vadd.f32 %v367_v11, %v340_v5  ;;  %492 = vrot.lane.b32.xlu1 %v2112_v10, %s1729_s18  ;;  %375 = vrot.lane.b32.xlu0 %v2112_v10, %s1730_s17 }
 0x1dc   : > { %v371_v13 = vpack.c.bf16 %v368_v12, %v368_v12 }
 0x1de   : > { %v398_v14 = vunpack.c.l.b16 %v371_v13 }
 0x1e0   : > { %v2116_v15 = vpack.c.b16 %v398_v14, %v398_v14 }
 0x1e2   : > { %515 = vrot.lane.b32.xlu2 %v2116_v15, %s1729_s18  ;;  %490 = vrot.lane.b32.xlu1 %v2112_v10, %s1731_s19 }
 0x1e3   : > { %400 = vrot.lane.b32.xlu0 %v2116_v15, %s1730_s17 }
 0x1ea   : > { %513 = vrot.lane.b32.xlu2 %v2116_v15, %s1731_s19  ;;  %638 = vrot.lane.b32.xlu1 %v2116_v15, %s1732_s24  ;;  %s1008_s19 = scalar_lea.vmem %s2313_s8, %s1515_s30 }
 0x1eb   : > { %615 = vrot.lane.b32.xlu0 %v2112_v10, %s1732_s24 }
 0x1f2   : > { %613 = vrot.lane.b32.xlu2 %v2112_v10, %s1733_s23  ;;  %738 = vrot.lane.b32.xlu1 %v2112_v10, %s1734_s2 }
 0x1f3   : > { %636 = vrot.lane.b32.xlu0 %v2116_v15, %s1733_s23 }
 0x1fa   : > { %761 = vrot.lane.b32.xlu2 %v2116_v15, %s1734_s2  ;;  %759 = vrot.lane.b32.xlu1 %v2116_v15, %s1735_s22 }
 0x1fb   : > { %736 = vrot.lane.b32.xlu0 %v2112_v10, %s1735_s22 }
 0x23c   : > { %v516_v16 = vpop.permute.xlu2 %515 }
 0x23d   : > { %v521_v22 = vsel %vm377_vm9, %v516_v16, 0 }
 0x244   : > { %v514_v21 = vpop.permute.xlu2 %513 }
 0x24c   : > { %v493_v17 = vpop.permute.xlu1 %492  ;;  %v376_v18 = vpop.permute.xlu0 %375 }
 0x24d   : > { %v498_v19 = vsel %vm377_vm9, %v493_v17, 0  ;;  %v382_v20 = vsel %vm377_vm9, %v376_v18, 0  ;;  %v614_v27 = vpop.permute.xlu2 %613 }
 0x24e   : > { %507 = vmatpush.bf16.xpose.msrb.mxu0 %v498_v19  ;;  %391 = vmatpush.bf16.xpose.msra.mxu1 %v382_v20 }
 0x254   : > { %v491_v23 = vpop.permute.xlu1 %490 }
 0x255   : > { %v401_v24 = vpop.permute.xlu0 %400  ;;  %1421 = vmatmul.msk.bf16.vlgmr.msrb.gmra.mxu0 %vm377_vm9, %v491_v23  ;;  %1417 = vmatmul.msk.bf16.vlgmr.msra.gmra.mxu1 %vm377_vm9, %v370_v8  ;;  %v762_v32 = vpop.permute.xlu2 %761 }
 0x256   : > { %530 = vmatpush.bf16.xpose.msrb.mxu1 %v521_v22  ;;  %v406_v25 = vsel %vm377_vm9, %v401_v24, 0  ;;  %v767_v35 = vsel %vm377_vm9, %v762_v32, 0 }
 0x257   : > { %415 = vmatpush.bf16.xpose.msra.mxu2 %v406_v25 }
 0x25c   : > { %v639_v28 = vpop.permute.xlu1 %638 }
 0x25d   : > { %v644_v29 = vsel %vm377_vm9, %v639_v28, 0  ;;  %v616_v30 = vpop.permute.xlu0 %615 }
 0x25e   : > { %v621_v31 = vsel %vm377_vm9, %v616_v30, 0  ;;  %1418 = vmatmul.msk.bf16.vlgmr.msra.gmra.mxu2 %vm377_vm9, %v371_v13  ;;  %653 = vmatpush.bf16.xpose.msra.mxu1 %v644_v29 }
 0x25f   : > { %630 = vmatpush.bf16.xpose.msra.mxu0 %v621_v31 }
 0x264   : > { %v739_v33 = vpop.permute.xlu1 %738 }
 0x265   : > { %v744_v34 = vsel %vm377_vm9, %v739_v33, 0  ;;  %1422 = vmatmul.msk.bf16.vlgmr.msrb.gmra.mxu1 %vm377_vm9, %v514_v21  ;;  %v637_v36 = vpop.permute.xlu0 %636 }
 0x266   : > { %1425 = vmatmul.msk.bf16.vlgmr.msra.gmra.mxu0 %vm377_vm9, %v614_v27  ;;  %776 = vmatpush.bf16.xpose.msrb.mxu1 %v767_v35 }
 0x267   : > { %753 = vmatpush.bf16.xpose.msrb.mxu0 %v744_v34 }
 0x26c   : > { %v760_v38 = vpop.permute.xlu1 %759 }
 0x26d   : > { %v737_v37 = vpop.permute.xlu0 %736 }
 0x275   : > { %1426 = vmatmul.msk.bf16.vlgmr.msra.gmra.mxu1 %vm377_vm9, %v637_v36 }
 0x276   : > { %1429 = vmatmul.msk.bf16.vlgmr.msrb.gmra.mxu0 %vm377_vm9, %v737_v37 }
 0x285   : > { %1430 = vmatmul.msk.bf16.vlgmr.msrb.gmra.mxu1 %vm377_vm9, %v760_v38 }
 0x2d2   : > { %v509_v39 = vpop.f32.mrf.mxu0  ;;  %v393_v40 = vpop.f32.mrf.mxu1 }
 0x2d3   : > { %v536_v41 = vsel %vm377_vm9, %v509_v39, -inf  ;;  %v421_v42 = vsel %vm377_vm9, %v393_v40, -inf }
 0x2d4   : > { %537 = vmax.xlane.f32.xlu1 %v536_v41  ;;  %422 = vmax.xlane.f32.xlu2 %v421_v42 }
 0x2da   : > { %v511_v43 = vpop.f32.mrf.mxu0  ;;  %v395_v44 = vpop.f32.mrf.mxu1 }
 0x2e1   : > { %v417_v45 = vpop.f32.mrf.mxu2 }
 0x2e2   : > { %v424_v46 = vsel %vm377_vm9, %v417_v45, -inf  ;;  %v2149_v47 = vpop.f32.mrf.mxu1 }
 0x2e3   : > { %425 = vmax.xlane.f32.xlu0 %v424_v46  ;;  %v632_v48 = vpop.f32.mrf.mxu0  ;;  %v539_v49 = vsel %vm377_vm9, %v2149_v47, -inf }
 0x2e4   : > { %v659_v50 = vsel %vm377_vm9, %v632_v48, -inf  ;;  %540 = vmax.xlane.f32.xlu2 %v539_v49 }
 0x2e5   : > { %660 = vmax.xlane.f32.xlu1 %v659_v50 }
 0x2e9   : > { %v419_v51 = vpop.f32.mrf.mxu2 }
 0x2ea   : > { %v534_v52 = vpop.f32.mrf.mxu1 }
 0x2eb   : > { %v634_v53 = vpop.f32.mrf.mxu0 }
 0x2f2   : > { %v2154_v54 = vpop.f32.mrf.mxu1 }
 0x2f3   : > { %v755_v56 = vpop.f32.mrf.mxu0  ;;  %v662_v57 = vsel %vm377_vm9, %v2154_v54, -inf }
 0x2f4   : > { %v782_v58 = vsel %vm377_vm9, %v755_v56, -inf  ;;  %663 = vmax.xlane.f32.xlu2 %v662_v57 }
 0x2f5   : > { %783 = vmax.xlane.f32.xlu1 %v782_v58 }
 0x2f7   : > { %445 = vrot.lane.b32.xlu0 %v2112_v10, %s1736_s26 }
 0x2fa   : > { %v657_v59 = vpop.f32.mrf.mxu1 }
 0x2fb   : > { %v757_v60 = vpop.f32.mrf.mxu0 }
 0x302   : > { %v2161_v61 = vpop.f32.mrf.mxu1 }
 0x303   : > { %v785_v63 = vsel %vm377_vm9, %v2161_v61, -inf }
 0x30a   : > { %v780_v62 = vpop.f32.mrf.mxu1 }
 0x30e   : > { %560 = vrot.lane.b32.xlu1 %v2112_v10, %s1737_s25 }
 0x321   : > { %786 = vmax.xlane.f32.xlu0 %v785_v63 }
 0x335   : > { %683 = vrot.lane.b32.xlu0 %v2112_v10, %s1738_s3 }
 0x347   : > { %v538_v1 = vpop.xlane.xlu1 %537  ;;  %v423_v3 = vpop.xlane.xlu2 %422 }
 0x348   : > { %v542_v2 = vsub.f32 %v509_v39, %v538_v1  ;;  %v427_v5 = vsub.f32 %v393_v40, %v423_v3 }
 0x34a   : > { %v544_v6 = vmul.f32 1.442695, %v542_v2  ;;  %v429_v7 = vmul.f32 1.442695, %v427_v5 }
 0x34c   : > { %1579 = vpow2.f32 %v544_v6 }
 0x34d   : > { %1581 = vpow2.f32 %v429_v7 }
 0x352   : > { %v2169_v8 = vpop.eup %1579 }
 0x353   : > { %v2171_v9 = vpop.eup %1581  ;;  %v548_v11 = vsel %vm377_vm9, %v2169_v8, 0.0 }
 0x354   : > { %v433_v12 = vsel %vm377_vm9, %v2171_v9, 0.0  ;;  %549 = vadd.xlane.f32.xlu1 %v548_v11 }
 0x355   : > { %434 = vadd.xlane.f32.xlu2 %v433_v12 }
 0x356   : > { %v426_v13 = vpop.xlane.xlu0 %425 }
 0x357   : > { %v428_v14 = vsub.f32 %v417_v45, %v426_v13  ;;  %v541_v32 = vpop.xlane.xlu2 %540 }
 0x358   : > { %v661_v16 = vpop.xlane.xlu1 %660  ;;  %v543_v33 = vsub.f32 %v2149_v47, %v541_v32 }
 0x359   : > { %v431_v17 = vmul.f32 1.442695, %v428_v14  ;;  %v665_v18 = vsub.f32 %v632_v48, %v661_v16 }
 0x35a   : > { %v546_v34 = vmul.f32 1.442695, %v543_v33 }
 0x35b   : > { %1583 = vpow2.f32 %v431_v17  ;;  %v667_v19 = vmul.f32 1.442695, %v665_v18 }
 0x35d   : > { %1585 = vpow2.f32 %v667_v19 }
 0x361   : > { %v2177_v20 = vpop.eup %1583 }
 0x362   : > { %v436_v21 = vsel %vm377_vm9, %v2177_v20, 0.0 }
 0x363   : > { %437 = vadd.xlane.f32.xlu1 %v436_v21  ;;  %v2181_v22 = vpop.eup %1585 }
 0x364   : > { %v671_v23 = vsel %vm377_vm9, %v2181_v22, 0.0 }
 0x365   : > { %672 = vadd.xlane.f32.xlu0 %v671_v23 }
 0x367   : > { %v664_v35 = vpop.xlane.xlu2 %663 }
 0x368   : > { %v784_v24 = vpop.xlane.xlu1 %783  ;;  %v666_v37 = vsub.f32 %v2154_v54, %v664_v35 }
 0x369   : > { %v788_v25 = vsub.f32 %v755_v56, %v784_v24  ;;  %v446_v27 = vpop.permute.xlu0 %445 }
 0x36a   : > { %v452_v28 = vsel %vm450_vm10, %v446_v27, 0  ;;  %v669_v39 = vmul.f32 1.442695, %v666_v37 }
 0x36b   : > { %v790_v29 = vmul.f32 1.442695, %v788_v25  ;;  %461 = vmatpush.bf16.msra.mxu3 %v452_v28 }
 0x36d   : > { %467 = vrot.lane.b32.xlu2 %v2116_v15, %s1736_s26  ;;  %1587 = vpow2.f32 %v790_v29  ;;  %s1235_s26 = sld [smem:[#allocation8]] (%p323_p0) }
 0x36e   : > { %1589 = vpow2.f32 %v546_v34 }
 0x36f   : > { %1591 = vpow2.f32 %v669_v39 }
 0x373   : > { %v2188_v30 = vpop.eup %1587 }
 0x374   : > { %v794_v31 = vsel %vm377_vm9, %v2188_v30, 0.0  ;;  %v1590_v36 = vpop.eup %1589 }
 0x375   : > { %795 = vadd.xlane.f32.xlu0 %v794_v31  ;;  %v551_v38 = vsel %vm377_vm9, %v1590_v36, 0.0  ;;  %v2198_v41 = vpop.eup %1591 }
 0x376   : > { %v674_v42 = vsel %vm377_vm9, %v2198_v41, 0.0 }
 0x37c   : > { %581 = vrot.lane.b32.xlu1 %v2116_v15, %s1737_s25 }
 0x380   : > { %v561_v46 = vpop.permute.xlu1 %560 }
 0x389   : > { %827 = vrot.lane.b32.xlu0 %v2116_v15, %s1739_s29 }
 0x394   : > { %v787_v40 = vpop.xlane.xlu0 %786 }
 0x395   : > { %v789_v45 = vsub.f32 %v2161_v61, %v787_v40 }
 0x396   : > { %552 = vadd.xlane.f32.xlu2 %v551_v38 }
 0x397   : > { %v792_v48 = vmul.f32 1.442695, %v789_v45 }
 0x3a6   : > { %675 = vadd.xlane.f32.xlu1 %v674_v42 }
 0x3a7   : > { %v684_v43 = vpop.permute.xlu0 %683 }
 0x3a8   : > { %v689_v44 = vsel %vm450_vm10, %v684_v43, 0 }
 0x3a9   : > { %698 = vmatpush.bf16.msrb.mxu2 %v689_v44 }
 0x3ae   : > { %704 = vrot.lane.b32.xlu2 %v2116_v15, %s1738_s3  ;;  %v566_v15 = vsel %vm450_vm10, %v561_v46, 0 }
 0x3bf   : > { %806 = vrot.lane.b32.xlu1 %v2112_v10, %s1739_s29 }
 0x3c7   : > { %v550_v49 = vpop.xlane.xlu1 %549 }
 0x3c8   : > { %v435_v47 = vpop.xlane.xlu2 %434 }
 0x3c9   : > { %1593 = vrcp.f32 %v435_v47 }
 0x3ca   : > { %1595 = vpow2.f32 %v792_v48 }
 0x3cf   : > { %v1594_v50 = vpop.eup %1593 }
 0x3d0   : > { %v468_v51 = vpop.permute.xlu2 %467  ;;  %v441_v52 = vmul.f32 %v1594_v50, %v2171_v9  ;;  %v1596_v56 = vpop.eup %1595 }
 0x3d1   : > { %v473_v53 = vsel %vm450_vm10, %v468_v51, 0  ;;  %v797_v57 = vsel %vm377_vm9, %v1596_v56, 0.0 }
 0x3d2   : > { %482 = vmatpush.bf16.msrb.mxu3 %v473_v53  ;;  %v443_v54 = vpack.c.bf16 %v441_v52, %v441_v52  ;;  %v1511_v52 = vld [vmem:[%s863_s0 + $0x8] sm:$0xff] }
 0x3d3   : > { %890 = vmatpush.bf16.msra.mxu0 %v1511_v52  ;;  %v1519_v52 = vld [vmem:[%s1008_s19 + $0x18] sm:$0xff] }
 0x3d4   : > { %1419 = vmatmul.msk.bf16.vlgmr.msra.gmra.mxu3 %vm377_vm9, %v443_v54 }
 0x3d6   : > { %575 = vmatpush.bf16.msra.mxu3 %v566_v15  ;;  %v438_v10 = vpop.xlane.xlu1 %437 }
 0x3d7   : > { %1597 = vrcp.f32 %v438_v10  ;;  %798 = vadd.xlane.f32.xlu2 %v797_v57 }
 0x3d8   : > { %v673_v58 = vpop.xlane.xlu0 %672 }
 0x3d9   : > { %1599 = vrcp.f32 %v673_v58 }
 0x3da   : > { %1601 = vrcp.f32 %v550_v49 }
 0x3dd   : > { %v1598_v59 = vpop.eup %1597 }
 0x3de   : > { %v442_v60 = vmul.f32 %v1598_v59, %v2177_v20  ;;  %v868_v59 = vperm.slane %v2109_v4, 2 }
 0x3df   : > { %v1600_v61 = vpop.eup %1599 }
 0x3e0   : > { %v679_v62 = vmul.f32 %v1600_v61, %v2181_v22  ;;  %v444_v63 = vpack.c.bf16 %v442_v60, %v442_v60  ;;  %v1602_v2 = vpop.eup %1601 }
 0x3e1   : > { %v556_v3 = vmul.f32 %v1602_v2, %v2169_v8 }
 0x3e2   : > { %v681_v1 = vpack.c.bf16 %v679_v62, %v679_v62 }
 0x3e3   : > { %v558_v7 = vpack.c.bf16 %v556_v3, %v556_v3 }
 0x3e4   : > { %1420 = vmatmul.msk.bf16.vlgmr.msrb.gmra.mxu3 %vm377_vm9, %v444_v63  ;;  %1427 = vmatmul.msk.bf16.vlgmr.msrb.gmra.mxu2 %vm377_vm9, %v681_v1 }
 0x3e8   : > { %v796_v11 = vpop.xlane.xlu0 %795 }
 0x3ee   : > { %v582_v5 = vpop.permute.xlu1 %581 }
 0x3ef   : > { %v587_v6 = vsel %vm450_vm10, %v582_v5, 0 }
 0x3f0   : > { %596 = vmatpush.bf16.msrb.mxu3 %v587_v6 }
 0x3f4   : > { %1423 = vmatmul.msk.bf16.vlgmr.msra.gmra.mxu3 %vm377_vm9, %v558_v7 }
 0x3fb   : > { %v828_v16 = vpop.permute.xlu0 %827 }
 0x3fc   : > { %v833_v8 = vsel %vm450_vm10, %v828_v16, 0 }
 0x409   : > { %v553_v9 = vpop.xlane.xlu2 %552 }
 0x40a   : > { %1603 = vrcp.f32 %v553_v9 }
 0x410   : > { %v1604_v12 = vpop.eup %1603 }
 0x411   : > { %v557_v13 = vmul.f32 %v1604_v12, %v1590_v36  ;;  %v705_v14 = vpop.permute.xlu2 %704 }
 0x412   : > { %v710_v17 = vsel %vm450_vm10, %v705_v14, 0 }
 0x413   : > { %v559_v18 = vpack.c.bf16 %v557_v13, %v557_v13  ;;  %719 = vmatpush.bf16.msra.mxu3 %v710_v17 }
 0x415   : > { %1424 = vmatmul.msk.bf16.vlgmr.msrb.gmra.mxu3 %vm377_vm9, %v559_v18 }
 0x417   : > { %842 = vmatpush.bf16.msrb.mxu3 %v833_v8 }
 0x419   : > { %v676_v19 = vpop.xlane.xlu1 %675 }
 0x41a   : > { %1605 = vrcp.f32 %v676_v19  ;;  %v1513_v19 = vld [vmem:[%s952_s21] sm:$0xff] }
 0x41b   : > { %1607 = vrcp.f32 %v796_v11 }
 0x420   : > { %v1606_v20 = vpop.eup %1605 }
 0x421   : > { %v680_v21 = vmul.f32 %v1606_v20, %v2198_v41  ;;  %v1608_v23 = vpop.eup %1607 }
 0x422   : > { %v802_v24 = vmul.f32 %v1608_v23, %v2188_v30 }
 0x423   : > { %v682_v22 = vpack.c.bf16 %v680_v21, %v680_v21 }
 0x424   : > { %v804_v28 = vpack.c.bf16 %v802_v24, %v802_v24 }
 0x425   : > { %1428 = vmatmul.msk.bf16.vlgmr.msra.gmra.mxu3 %vm377_vm9, %v682_v22 }
 0x431   : > { %v807_v25 = vpop.permute.xlu1 %806 }
 0x432   : > { %v812_v27 = vsel %vm450_vm10, %v807_v25, 0 }
 0x433   : > { %821 = vmatpush.bf16.msra.mxu2 %v812_v27 }
 0x436   : > { %1431 = vmatmul.msk.bf16.vlgmr.msra.gmra.mxu2 %vm377_vm9, %v804_v28 }
 0x44a   : > { %v799_v29 = vpop.xlane.xlu2 %798 }
 0x44b   : > { %1609 = vrcp.f32 %v799_v29 }
 0x451   : > { %v1610_v31 = vpop.eup %1609 }
 0x452   : > { %v803_v32 = vmul.f32 %v1610_v31, %v1596_v56  ;;  %v1510_v56 = vld [vmem:[%s863_s0] sm:$0xff] }
 0x453   : > { %891 = vmatpush.bf16.msra.mxu0 %v1510_v56  ;;  %v1516_v56 = vld [vmem:[%s1008_s19] sm:$0xff] }
 0x454   : > { %v805_v33 = vpack.c.bf16 %v803_v32, %v803_v32 }
 0x456   : > { %1432 = vmatmul.msk.bf16.vlgmr.msrb.gmra.mxu3 %vm377_vm9, %v805_v33 }
 0x457   : > { %v463_v34 = vpop.f32.mrf.mxu3 }
 0x458   : > { %488 = vst.msk [vmem:[#allocation2] sm:$0xff] %vm377_vm9, %v463_v34 }
 0x45f   : > { %v465_v35 = vpop.f32.mrf.mxu3 }
 0x467   : > { %v484_v36 = vpop.f32.mrf.mxu3  ;;  %v700_v30 = vpop.f32.mrf.mxu2 }
 0x468   : > { %489 = vst.msk [vmem:[#allocation2 + $0x8] sm:$0xff] %vm377_vm9, %v484_v36  ;;  %727 = vrot.lane.b32.xlu2 %v700_v30, %s1740_s28 }
 0x46f   : > { %v486_v37 = vpop.f32.mrf.mxu3  ;;  %v702_v38 = vpop.f32.mrf.mxu2 }
 0x470   : > { %v944_v38 = vperm.slane %v2109_v4, 3 }
 0x477   : > { %v577_v39 = vpop.f32.mrf.mxu3 }
 0x478   : > { %604 = vrot.lane.b32.xlu1 %v577_v39, %s1741_s20 }
 0x47f   : > { %v579_v40 = vpop.f32.mrf.mxu3 }
 0x498   : > { %v598_v41 = vpop.f32.mrf.mxu3 }
 0x499   : > { %606 = vrot.lane.b32.xlu1 %v598_v41, %s1741_s20  ;;  %s1279_s20 = sshll.u32 (%p323_p0), %s2318_s13, 4  ;;  %s1280_s20 = int_to_ptr.hbm [resolvable:$true] %s1279_s20 }
 0x4a0   : > { %v600_v42 = vpop.f32.mrf.mxu3 }
 0x4a8   : > { %v721_v43 = vpop.f32.mrf.mxu3 }
 0x4a9   : > { %729 = vrot.lane.b32.xlu1 %v721_v43, %s1740_s28  ;;  %v947_v43 = vperm.slane %v2109_v4, 4 }
 0x4b0   : > { %v723_v44 = vpop.f32.mrf.mxu3 }
 0x4b9   : > { %v823_v45 = vpop.f32.mrf.mxu2 }
 0x4ba   : > { %850 = vrot.lane.b32.xlu0 %v823_v45, %s1742_s27 }
 0x4c1   : > { %v825_v46 = vpop.f32.mrf.mxu2 }
 0x4c2   : > { %v728_v50 = vpop.permute.xlu2 %727 }
 0x4d9   : > { %v844_v47 = vpop.f32.mrf.mxu3 }
 0x4da   : > { %852 = vrot.lane.b32.xlu1 %v844_v47, %s1742_s27 }
 0x4e1   : > { %v846_v48 = vpop.f32.mrf.mxu3 }
 0x4e2   : > { %v1523_v48 = vld [vmem:[%s1008_s19 + $0x38] sm:$0xff] }
 0x4e3   : > { %1074 = vmatpush.bf16.msrb.mxu2 %v1523_v48 }
 0x4ea   : > { %v605_v49 = vpop.permute.xlu1 %604 }
 0x4eb   : > { %611 = vst.msk [vmem:[#allocation2] sm:$0xff] %vm610_vm11, %v605_v49  ;;  %v1522_v49 = vld [vmem:[%s1008_s19 + $0x30] sm:$0xff] }
 0x4ec   : > { %734 = vst.msk [vmem:[#allocation2] sm:$0xff] %vm733_vm12, %v728_v50  ;;  %1075 = vmatpush.bf16.msrb.mxu2 %v1522_v49  ;;  %v1521_v50 = vld [vmem:[%s1008_s19 + $0x28] sm:$0xff] }
 0x4f0   : > { %1076 = vmatpush.bf16.msrb.mxu2 %v1521_v50 }
 0x50b   : > { %v607_v51 = vpop.permute.xlu1 %606 }
 0x50c   : > { %612 = vst.msk [vmem:[#allocation2 + $0x8] sm:$0xff] %vm610_vm11, %v607_v51  ;;  %v1520_v51 = vld [vmem:[%s1008_s19 + $0x20] sm:$0xff]  ;;  %vm1153_vm11 = vcmask (%p323_p0), 1041409  }
 0x50d   : > { %1077 = vmatpush.bf16.msrb.mxu2 %v1520_v51  ;;  %v1134_v51 = vperm.slane %v2109_v4, 6 }
 0x511   : > { %1078 = vmatpush.bf16.msrb.mxu2 %v1519_v52 }
 0x51b   : > { %v730_v53 = vpop.permute.xlu1 %729 }
 0x51c   : > { %735 = vst.msk [vmem:[#allocation2 + $0x8] sm:$0xff] %vm733_vm12, %v730_v53  ;;  %v1518_v53 = vld [vmem:[%s1008_s19 + $0x10] sm:$0xff]  ;;  %vm1244_vm12 = vcmask (%p323_p0), 9217  }
 0x51d   : > { %1079 = vmatpush.bf16.msrb.mxu2 %v1518_v53 }
 0x52c   : > { %v851_v54 = vpop.permute.xlu0 %850 }
 0x52d   : > { %857 = vst.msk [vmem:[#allocation2] sm:$0xff] %vm856_vm13, %v851_v54  ;;  %v1517_v54 = vld [vmem:[%s1008_s19 + $0x8] sm:$0xff] }
 0x52e   : > { %1080 = vmatpush.bf16.msrb.mxu2 %v1517_v54  ;;  %v1137_v54 = vperm.slane %v2109_v4, 7 }
 0x532   : > { %1081 = vmatpush.bf16.msrb.mxu2 %v1516_v56 }
 0x534   : > { %v859_v10 = vld [vmem:[#allocation2] sm:$0xff] }
 0x54c   : > { %v853_v15 = vpop.permute.xlu1 %852 }
 0x54d   : > { %858 = vst.msk [vmem:[#allocation2 + $0x8] sm:$0xff] %vm856_vm13, %v853_v15  ;;  %v957_v15 = vperm.slane %v2109_v4, 1 }
 0x554   : > { %v860_v57 = vld [vmem:[#allocation2 + $0x8] sm:$0xff] }
 0x555   : > { %v861_v58 = vpack.c.bf16 %v860_v57, %v859_v10 }
 0x557   : > { %1442 = vmatmul.msk.bf16.vlgmr.msra.gmra.mxu0 %vm263_vm1, %v861_v58 }
 0x5d4   : > { %v893_v60 = vpop.f32.mrf.mxu0 }
 0x5d5   : > { %v894_v61 = vadd.f32 %v893_v60, %v868_v59 }
 0x5d7   : > { %v898_v62 = vadd.f32 %v1719_v55, %v894_v61 }
 0x5d9   : > { %v900_v63 = vsel %vm263_vm1, %v898_v62, 0.0 }
 0x5da   : > { %901 = vadd.xlane.f32.xlu0 %v900_v63 }
 0x5dc   : > { %v895_v1 = vpop.f32.mrf.mxu0 }
 0x5dd   : > { %v896_v2 = vadd.f32 %v895_v1, %v868_v59 }
 0x5df   : > { %v899_v3 = vadd.f32 %v1715_v0, %v896_v2  ;;  %v1514_v0 = vld [vmem:[%s952_s21 + $0x8] sm:$0xff] }
 0x5e0   : > { %979 = vmatpush.bf16.msra.mxu1 %v1514_v0 }
 0x5e1   : > { %v903_v5 = vsel %vm263_vm1, %v899_v3, 0.0 }
 0x5e2   : > { %904 = vadd.xlane.f32.xlu1 %v903_v5 }
 0x5e4   : > { %980 = vmatpush.bf16.msra.mxu1 %v1513_v19 }
 0x64d   : > { %v902_v6 = vpop.xlane.xlu0 %901 }
 0x64e   : > { %v906_v7 = vmul.f32 %v902_v6, %v2066_v26 }
 0x650   : > { %v908_v9 = vsub.f32 %v898_v62, %v906_v7 }
 0x652   : > { %v910_v11 = vmul.f32 %v908_v9, %v908_v9 }
 0x654   : > { %v912_v12 = vsel %vm263_vm1, %v910_v11, 0.0 }
 0x655   : > { %v905_v13 = vpop.xlane.xlu1 %904  ;;  %913 = vadd.xlane.f32.xlu2 %v912_v12 }
 0x656   : > { %v907_v55 = vmul.f32 %v905_v13, %v2066_v26 }
 0x658   : > { %v909_v14 = vsub.f32 %v899_v3, %v907_v55 }
 0x65a   : > { %v911_v16 = vmul.f32 %v909_v14, %v909_v14 }
 0x65c   : > { %v915_v17 = vsel %vm263_vm1, %v911_v16, 0.0 }
 0x65d   : > { %916 = vadd.xlane.f32.xlu0 %v915_v17 }
 0x6c8   : > { %v914_v18 = vpop.xlane.xlu2 %913 }
 0x6c9   : > { %v918_v8 = vmul.f32 %v914_v18, %v2066_v26  ;;  %v1025_v18 = vperm.slane %v2109_v4, 5  ;;  %v1525_v4 = vld [vmem:[%s2315_s10 + $0x8] sm:$0xff] (%p323_p0) }
 0x6ca   :  { %1177 = vmatpush.bf16.msra.mxu0 (%p323_p0), %v1525_v4 }
 0x6cb   : > { %v920_v20 = vadd.f32 1e-12, %v918_v8 }
 0x6cd   : > { %1611 = vrsqrt.f32 %v920_v20  ;;  %vm928_vm15 = vweird.f32 %v920_v20 }
 0x6d0   : > { %v917_v21 = vpop.xlane.xlu0 %916 }
 0x6d1   : > { %v919_v22 = vmul.f32 %v917_v21, %v2066_v26 }
 0x6d3   : > { %v1612_v23 = vpop.eup %1611  ;;  %v921_v24 = vadd.f32 1e-12, %v919_v22 }
 0x6d4   : > { %v923_v25 = vmul.f32 %v1612_v23, %v920_v20  ;;  %vm929_vm14 = vweird.f32 %v1612_v23 }
 0x6d5   : > { %1613 = vrsqrt.f32 %v921_v24  ;;  %vm930_vm0 = vmor %vm928_vm15, %vm929_vm14  ;;  %vm938_vm3 = vweird.f32 %v921_v24  ;;  %vm1222_vm14 = vcmask (%p323_p0), 8192   ;;  %vm1270_vm15 = vcmask (%p323_p0), 0  }
 0x6d6   : > { %v924_v27 = vmul.f32 %v1612_v23, %v923_v25 }
 0x6d8   : > { %v925_v28 = vmul.f32 0.5, %v924_v27 }
 0x6da   : > { %v926_v29 = vsub.f32 1.5, %v925_v28 }
 0x6db   : > { %v1614_v31 = vpop.eup %1613 }
 0x6dc   : > { %v927_v32 = vmul.f32 %v1612_v23, %v926_v29  ;;  %v933_v33 = vmul.f32 %v1614_v31, %v921_v24  ;;  %vm939_vm2 = vweird.f32 %v1614_v31 }
 0x6dd   : > { %vm940_vm4 = vmor %vm938_vm3, %vm939_vm2 }
 0x6de   : > { %v934_v34 = vmul.f32 %v1614_v31, %v933_v33  ;;  %v931_v35 = vsel %vm930_vm0, %v1612_v23, %v927_v32 }
 0x6df   : > { %v942_v37 = vmul.f32 %v931_v35, %v908_v9 }
 0x6e0   : > { %v935_v36 = vmul.f32 0.5, %v934_v34 }
 0x6e1   : > { %v945_v42 = vmul.f32 %v944_v38, %v942_v37 }
 0x6e2   : > { %v936_v30 = vsub.f32 1.5, %v935_v36 }
 0x6e3   : > { %v948_v45 = vadd.f32 %v947_v43, %v945_v42 }
 0x6e4   : > { %v937_v39 = vmul.f32 %v1614_v31, %v936_v30 }
 0x6e6   : > { %v941_v40 = vsel %vm940_vm4, %v1614_v31, %v937_v39 }
 0x6e7   : > { %v943_v41 = vmul.f32 %v941_v40, %v909_v14 }
 0x6e9   : > { %v946_v44 = vmul.f32 %v944_v38, %v943_v41 }
 0x6eb   : > { %v949_v46 = vadd.f32 %v947_v43, %v946_v44 }
 0x6ed   : > { %v950_v47 = vpack.c.bf16 %v949_v46, %v948_v45 }
 0x6ef   : > { %1452 = vmatmul.msk.bf16.vlgmr.msra.gmra.mxu1 %vm263_vm1, %v950_v47 }
 0x76c   : > { %v982_v10 = vpop.f32.mrf.mxu1 }
 0x76d   : > { %v983_v57 = vadd.f32 %v982_v10, %v957_v15 }
 0x76f   : > { %v989_v58 = vmul.f32 0.044715, %v983_v57  ;;  %v987_v13 = vmul.f32 0.5, %v983_v57 }
 0x771   : > { %v991_v59 = vmul.f32 %v989_v58, %v983_v57 }
 0x773   : > { %v993_v60 = vmul.f32 %v991_v59, %v983_v57 }
 0x774   : > { %v984_v61 = vpop.f32.mrf.mxu1 }
 0x775   : > { %v995_v62 = vadd.f32 %v993_v60, %v983_v57  ;;  %v985_v63 = vadd.f32 %v984_v61, %v957_v15 }
 0x777   : > { %v990_v1 = vmul.f32 0.044715, %v985_v63  ;;  %v997_v2 = vmul.f32 0.7978846, %v995_v62  ;;  %v988_v55 = vmul.f32 0.5, %v985_v63 }
 0x779   : > { %v992_v3 = vmul.f32 %v990_v1, %v985_v63  ;;  %1615 = vtanh.f32 %v997_v2 }
 0x77b   : > { %v994_v5 = vmul.f32 %v992_v3, %v985_v63  ;;  %v1524_v3 = vld [vmem:[%s2315_s10] sm:$0xff] (%p323_p0) }
 0x77c   :  { %1178 = vmatpush.bf16.msra.mxu0 (%p323_p0), %v1524_v3 }
 0x77d   : > { %v996_v6 = vadd.f32 %v994_v5, %v985_v63 }
 0x77f   : > { %v998_v7 = vmul.f32 0.7978846, %v996_v6  ;;  %v1616_v9 = vpop.eup %1615 }
 0x780   : > { %v1001_v11 = vadd.f32 1.0, %v1616_v9 }
 0x781   : > { %1617 = vtanh.f32 %v998_v7 }
 0x782   : > { %v1003_v16 = vmul.f32 %v1001_v11, %v987_v13  ;;  %v1623_v13 = vld [vmem:[%s2317_s12] ss:$0 sm:$0xff] (%p323_p0) }
 0x787   : > { %v1618_v12 = vpop.eup %1617 }
 0x788   : > { %v1002_v14 = vadd.f32 1.0, %v1618_v12  ;;  %v1526_v12 = vld [vmem:[%s2316_s11] sm:$0xff] (%p323_p0) }
 0x78a   : > { %v1004_v17 = vmul.f32 %v1002_v14, %v988_v55 }
 0x78c   : > { %v1005_v0 = vpack.c.bf16 %v1004_v17, %v1003_v16 }
 0x78e   : > { %1082 = vmatmul.bf16.vlgmr.msrb.gmra.mxu2 %v1005_v0 }
 0x811   : > { %v1083_v8 = vpop.f32.mrf.mxu2 }
 0x812   : > { %v1084_v19 = vadd.f32 %v1083_v8, %v1025_v18 }
 0x814   : > { %v1088_v20 = vadd.f32 %v1084_v19, %v948_v45  ;;  %v1624_v19 = vld [vmem:[%s2317_s12 + $0x1] ss:$0 sm:$0xff] (%p323_p0) }
 0x816   : > { %v1090_v21 = vsel %vm263_vm1, %v1088_v20, 0.0 }
 0x817   : > { %1091 = vadd.xlane.f32.xlu1 %v1090_v21 }
 0x819   : > { %v1085_v22 = vpop.f32.mrf.mxu2 }
 0x81a   : > { %v1086_v23 = vadd.f32 %v1085_v22, %v1025_v18  ;;  %v1220_v18 = vlaneseq (%p323_p0) }
 0x81c   : > { %v1089_v24 = vadd.f32 %v1086_v23, %v949_v46  ;;  %v1221_v8 = vand.u32 (%p323_p0), 127, %v1220_v18 }
 0x81e   : > { %v1093_v25 = vsel %vm263_vm1, %v1089_v24, 0.0 }
 0x81f   : > { %1094 = vadd.xlane.f32.xlu0 %v1093_v25  ;;  %v1236_v25 = vstv (%p323_p0), %s1235_s26 }
 0x88a   : > { %v1092_v27 = vpop.xlane.xlu1 %1091 }
 0x88b   : > { %v1096_v28 = vmul.f32 %v1092_v27, %v2066_v26 }
 0x88d   : > { %v1098_v29 = vsub.f32 %v1088_v20, %v1096_v28  ;;  %v1258_v20 = vstv (%p323_p0), %s1505_s4 }
 0x88e   :  { %vm1259_vm13 = vcmp.eq.s32.totalorder (%p323_p0), %v1221_v8, %v1258_v20 }
 0x88f   : > { %v1100_v31 = vmul.f32 %v1098_v29, %v1098_v29 }
 0x891   : > { %v1102_v32 = vsel %vm263_vm1, %v1100_v31, 0.0 }
 0x892   : > { %v1095_v33 = vpop.xlane.xlu0 %1094  ;;  %1103 = vadd.xlane.f32.xlu2 %v1102_v32 }
 0x893   : > { %v1097_v34 = vmul.f32 %v1095_v33, %v2066_v26 }
 0x895   : > { %v1099_v35 = vsub.f32 %v1089_v24, %v1097_v34 }
 0x897   : > { %v1101_v36 = vmul.f32 %v1099_v35, %v1099_v35 }
 0x899   : > { %v1105_v30 = vsel %vm263_vm1, %v1101_v36, 0.0 }
 0x89a   : > { %1106 = vadd.xlane.f32.xlu1 %v1105_v30 }
 0x905   : > { %v1104_v37 = vpop.xlane.xlu2 %1103 }
 0x906   : > { %v1108_v38 = vmul.f32 %v1104_v37, %v2066_v26 }
 0x908   : > { %v1110_v39 = vadd.f32 1e-12, %v1108_v38 }
 0x90a   : > { %1619 = vrsqrt.f32 %v1110_v39  ;;  %vm1118_vm6 = vweird.f32 %v1110_v39 }
 0x90d   : > { %v1107_v40 = vpop.xlane.xlu1 %1106 }
 0x90e   : > { %v1109_v41 = vmul.f32 %v1107_v40, %v2066_v26  ;;  %v1527_v26 = vld [vmem:[%s2316_s11 + $0x8] sm:$0xff] (%p323_p0)  ;;  %s1743_s11 = smov (%p323_p0), [#allocation9]  }
 0x90f   :  { %1213 = vmatpush.bf16.msra.mxu1 (%p323_p0), %v1527_v26  ;;  %s1277_s12 = sshll.u32 (%p323_p0), %s1743_s11, 4  ;;  %s1278_s12 = int_to_ptr.vmem [resolvable:$true] %s1277_s12 }
 0x910   : > { %v1620_v42 = vpop.eup %1619  ;;  %v1111_v43 = vadd.f32 1e-12, %v1109_v41 }
 0x911   : > { %v1113_v44 = vmul.f32 %v1620_v42, %v1110_v39  ;;  %vm1119_vm5 = vweird.f32 %v1620_v42 }
 0x912   : > { %1621 = vrsqrt.f32 %v1111_v43  ;;  %vm1120_vm7 = vmor %vm1118_vm6, %vm1119_vm5  ;;  %vm1128_vm9 = vweird.f32 %v1111_v43 }
 0x913   : > { %v1114_v45 = vmul.f32 %v1620_v42, %v1113_v44  ;;  %1214 = vmatpush.bf16.msra.mxu1 (%p323_p0), %v1526_v12 }
 0x915   : > { %v1115_v46 = vmul.f32 0.5, %v1114_v45 }
 0x917   : > { %v1116_v47 = vsub.f32 1.5, %v1115_v46 }
 0x918   : > { %v1622_v48 = vpop.eup %1621 }
 0x919   : > { %v1117_v49 = vmul.f32 %v1620_v42, %v1116_v47  ;;  %v1123_v50 = vmul.f32 %v1622_v48, %v1111_v43  ;;  %vm1129_vm8 = vweird.f32 %v1622_v48 }
 0x91a   : > { %vm1130_vm10 = vmor %vm1128_vm9, %vm1129_vm8 }
 0x91b   : > { %v1121_v52 = vsel %vm1120_vm7, %v1620_v42, %v1117_v49  ;;  %v1124_v53 = vmul.f32 %v1622_v48, %v1123_v50 }
 0x91c   : > { %v1132_v56 = vmul.f32 %v1121_v52, %v1098_v29 }
 0x91d   : > { %v1125_v15 = vmul.f32 0.5, %v1124_v53 }
 0x91e   : > { %v1135_v10 = vmul.f32 %v1134_v51, %v1132_v56 }
 0x91f   : > { %v1126_v57 = vsub.f32 1.5, %v1125_v15 }
 0x920   : > { %v1138_v58 = vadd.f32 %v1137_v54, %v1135_v10  }
 0x921   : > { %v1127_v59 = vmul.f32 %v1622_v48, %v1126_v57 }
 0x922   : > { %v2320_v55 = vmov %v1138_v58  ;;  %v1140_v1 = vpack.c.bf16 (%p323_p0), %v1138_v58, %v1138_v58 }
 0x923   : > { %v1131_v60 = vsel %vm1130_vm10, %v1622_v48, %v1127_v59 }
 0x924   : > { %v1133_v61 = vmul.f32 %v1131_v60, %v1099_v35  ;;  %v1150_v5 = vunpack.c.l.b16 (%p323_p0), %v1140_v1 }
 0x926   : > { %v1136_v62 = vmul.f32 %v1134_v51, %v1133_v61  ;;  %325 = sbr.rel (!%p323_p0) target bundleno = 330 (0x14a), region = 128 }
 0x928   : > { %v1139_v63 = vadd.f32 %v1137_v54, %v1136_v62  }
 0x92a   : > { %v2319_v0 = vmov %v1139_v63  ;;  %v1141_v2 = vpack.c.bf16 (%p323_p0), %v1139_v63, %v1139_v63 }
 0x92c   :  { %v1151_v6 = vunpack.c.l.b16 %v1141_v2 }
 0x92e   :  { %v1152_v7 = vrot.slane %v1151_v6, 7 }
 0x930   :  { %v1154_v9 = vsel %vm1153_vm11, %v1152_v7, %v1150_v5 }
 0x931   :  { %v1155_v11 = vpack.c.b16 %v1154_v9, %v1154_v9 }
 0x933   :  { %1495 = vmatmul.msk.bf16.vlgmr.msra.gmra.mxu0 %vm263_vm1, %v1155_v11 }
 0x9b0   :  { %v1180_v55 = vpop.f32.mrf.mxu0 }
 0x9b1   :  { %v1181_v14 = vadd.f32 %v1623_v13, %v1180_v55 }
 0x9b3   :  { %1625 = vtanh.f32 %v1181_v14 }
 0x9b8   :  { %v1182_v16 = vpop.f32.mrf.mxu0 }
 0x9b9   :  { %v1626_v17 = vpop.eup %1625 }
 0x9ba   :  { %v1185_v0 = vpack.c.bf16 %v1626_v17, %v1626_v17 }
 0x9bc   :  { %1504 = vmatmul.msk.bf16.vlgmr.msra.gmra.mxu1 %vm263_vm1, %v1185_v0  ;;  %vm1237_vm1 = vcmp.eq.s32.totalorder %v1221_v8, %v1236_v25 }
 0xa39   :  { %v1216_v21 = vpop.f32.mrf.mxu1 }
 0xa3a   :  { %v1217_v22 = vadd.f32 %v1624_v19, %v1216_v21 }
 0xa3c   :  { %v1245_v23 = vsel %vm1244_vm12, %v1217_v22, -inf  ;;  %v1260_v24 = vsel %vm1259_vm13, %v1217_v22, 0.0  ;;  %v1238_v29 = vsel %vm1237_vm1, %v1217_v22, 0.0  ;;  %v1223_v31 = vsel %vm1222_vm14, %v1217_v22, -inf }
 0xa3d   :  { %1246 = vmax.xlane.f32.xlu0 %v1245_v23  ;;  %v1261_v27 = vsel %vm1244_vm12, %v1260_v24, 0.0  ;;  %v1239_v32 = vsel %vm1222_vm14, %v1238_v29, 0.0 }
 0xa3e   :  { %1262 = vadd.xlane.f32.xlu2 %v1261_v27 }
 0xa41   :  { %v1218_v28 = vpop.f32.mrf.mxu1 }
 0xa45   :  { %1224 = vmax.xlane.f32.xlu0 %v1223_v31 }
 0xa46   :  { %1240 = vadd.xlane.f32.xlu2 %v1239_v32 }
 0xab0   :  { %v1247_v33 = vpop.xlane.xlu0 %1246 }
 0xab1   :  { %v1248_v34 = vsub.f32 %v1217_v22, %v1247_v33  ;;  %v1263_v46 = vpop.xlane.xlu2 %1262 }
 0xab3   :  { %v1249_v35 = vmul.f32 1.442695, %v1248_v34 }
 0xab5   :  { %1627 = vpow2.f32 %v1249_v35 }
 0xab8   :  { %v1225_v36 = vpop.xlane.xlu0 %1224 }
 0xab9   :  { %v1226_v30 = vsub.f32 %v1217_v22, %v1225_v36  ;;  %v1241_v52 = vpop.xlane.xlu2 %1240 }
 0xabb   :  { %v1628_v37 = vpop.eup %1627  ;;  %v1227_v38 = vmul.f32 1.442695, %v1226_v30 }
 0xabc   :  { %v1251_v39 = vsel %vm1244_vm12, %v1628_v37, 0.0 }
 0xabd   :  { %1629 = vpow2.f32 %v1227_v38  ;;  %1252 = vadd.xlane.f32.xlu1 %v1251_v39 }
 0xac3   :  { %v1630_v40 = vpop.eup %1629 }
 0xac4   :  { %v1229_v41 = vsel %vm1222_vm14, %v1630_v40, 0.0 }
 0xac5   :  { %1230 = vadd.xlane.f32.xlu1 %v1229_v41 }
 0xb30   :  { %v1253_v42 = vpop.xlane.xlu1 %1252 }
 0xb31   :  { %1631 = vlog2.f32 %v1253_v42 }
 0xb37   :  { %v1632_v43 = vpop.eup %1631 }
 0xb38   :  { %v1255_v44 = vmul.f32 0.6931472, %v1632_v43  ;;  %v1231_v45 = vpop.xlane.xlu1 %1230 }
 0xb39   :  { %1633 = vlog2.f32 %v1231_v45 }
 0xb3a   :  { %v1256_v47 = vadd.f32 %v1255_v44, %v1247_v33 }
 0xb3c   :  { %v1264_v49 = vsub.f32 %v1256_v47, %v1263_v46 }
 0xb3e   :  { %v1266_v54 = vrot.slane %v1264_v49, 1 }
 0xb3f   :  { %v1634_v48 = vpop.eup %1633 }
 0xb40   :  { %v1233_v50 = vmul.f32 0.6931472, %v1634_v48 }
 0xb42   :  { %v1234_v51 = vadd.f32 %v1233_v50, %v1225_v36 }
 0xb44   :  { %v1242_v53 = vsub.f32 %v1234_v51, %v1241_v52 }
 0xb46   :  { %v1268_v56 = vadd.f32 %v1266_v54, %v1242_v53 }
 0xb48   :  { %v1269_v15 = vmul.f32 0.5, %v1268_v56 }
 0xb4a   :  { %1271 = vst.msk [vmem:[#allocation9] sm:$0x1] %vm1270_vm15, %v1269_v15 }
 0xb4b   :  { %1282 = dma.vmem_to_hbm [thread:$0]  %s1278_s12, 16, %s1280_s20, [#allocation4]  }
 0xb4c   :  { %1711 = dma.done.wait [#allocation4], 16  }
 0xb4d   :  { %1712 = vsyncadd [#allocation4], 4294967280 }
 0xb4e   :  { %1287 = vsyncpa [#allocation4], 1 }
 0xb4f   :  { %1288 = vsyncpa [#allocation5], 1 }
 0xb50   :  { %1289 = vsyncpa [#allocation7], 1 }

</bundles_post_ra>
